<compile_context>
chip_gen: v7x
topology: tpu7x:2x2x1
jax: 0.10.0
libtpu: 0.0.40
codegen_flags: <defaults>
</compile_context>

<pallas_src>
import functools
import math

import jax
import jax.numpy as jnp
from jax.experimental import pallas as pl
from jax.experimental.pallas import tpu as pltpu


# ----------------------------------------------------------------------------
# Model config
# ----------------------------------------------------------------------------
VOCAB, MAX_POS, HIDDEN, N_HEADS, FFN, N_LAYERS, N_LABELS = 50, 64, 32, 2, 64, 2, 3
HEAD_DIM = HIDDEN // N_HEADS


# ----------------------------------------------------------------------------
# In-kernel helpers (traced inside the kernel body)
# ----------------------------------------------------------------------------
def _ln(x, g, b, eps=1e-12):
    mu = jnp.mean(x, axis=-1, keepdims=True)
    xc = x - mu
    var = jnp.mean(xc * xc, axis=-1, keepdims=True)
    return xc * jax.lax.rsqrt(var + eps) * g + b


def _gelu(y):
    # TODO(synk): HF BERT uses erf-based gelu; tanh approximation differs <1e-3.
    return 0.5 * y * (1.0 + jnp.tanh(0.7978845608028654 * (y + 0.044715 * y * y * y)))


# ----------------------------------------------------------------------------
# Single fused kernel: embeddings -> N encoder layers -> pooler -> classifier
# ----------------------------------------------------------------------------
def _bert_fused_kernel(
    we_ref, pos_ref, typ_ref, eg_ref, eb_ref, bias_ref,
    wq_ref, wk_ref, wv_ref, bq_ref, bk_ref, bv_ref, wo_ref, bo_ref,
    ln1g_ref, ln1b_ref,
    w1_ref, b1_ref, w2_ref, b2_ref, ln2g_ref, ln2b_ref,
    pw_ref, pb_ref, cw_ref, cb_ref,
    o_ref,
    *, batch, seq, hidden, n_heads, head_dim, n_layers, scale):
    bf16 = jnp.bfloat16
    n = batch * seq

    # ---- embedding sum + LayerNorm ----
    x = we_ref[...] + pos_ref[...] + typ_ref[...]                    # (B, S, H)
    h = _ln(x, eg_ref[...], eb_ref[...]).reshape(n, hidden)          # (B*S, H)

    bias = bias_ref[...]                                             # (B, 1, S) additive mask

    # ---- encoder layers (static, fully unrolled: n_layers=2) ----
    for l in range(n_layers):
        h_bf = h.astype(bf16)
        attn_out = jnp.zeros((n, hidden), jnp.float32)
        for hd in range(n_heads):                                    # static unrolled
            # per-head weights are leading-dim ref views: no lane-dim slicing
            q = jnp.dot(h_bf, wq_ref[l, hd],
                        preferred_element_type=jnp.float32) + bq_ref[l, hd]
            k = jnp.dot(h_bf, wk_ref[l, hd],
                        preferred_element_type=jnp.float32) + bk_ref[l, hd]
            v = jnp.dot(h_bf, wv_ref[l, hd],
                        preferred_element_type=jnp.float32) + bv_ref[l, hd]
            q3 = q.reshape(batch, seq, head_dim).astype(bf16)
            k3 = k.reshape(batch, seq, head_dim).astype(bf16)
            v3 = v.reshape(batch, seq, head_dim).astype(bf16)
            s = jnp.einsum('bqd,bkd->bqk', q3, k3,
                           preferred_element_type=jnp.float32) * scale + bias
            s = s - jnp.max(s, axis=-1, keepdims=True)               # stable softmax
            p = jnp.exp(s)
            p = p * pl.reciprocal(jnp.sum(p, axis=-1, keepdims=True), approx=True)
            ctx = jnp.einsum('bqk,bkd->bqd', p.astype(bf16), v3,
                             preferred_element_type=jnp.float32)      # (B, S, Dh)
            # output projection folded per head with a pre-split (Dh, H) weight
            attn_out = attn_out + jnp.dot(
                ctx.reshape(n, head_dim).astype(bf16), wo_ref[l, hd],
                preferred_element_type=jnp.float32)
        attn_out = attn_out + bo_ref[l]
        h = _ln(h + attn_out, ln1g_ref[l], ln1b_ref[l])

        # ---- FFN: W1 -> gelu -> W2 -> residual -> LayerNorm ----
        y = jnp.dot(h.astype(bf16), w1_ref[l],
                    preferred_element_type=jnp.float32) + b1_ref[l]
        y = _gelu(y)
        ff = jnp.dot(y.astype(bf16), w2_ref[l],
                     preferred_element_type=jnp.float32) + b2_ref[l]
        h = _ln(h + ff, ln2g_ref[l], ln2b_ref[l])

    # ---- pooler ([CLS] token, tanh dense) + classifier ----
    cls = h.reshape(batch, seq, hidden)[:, 0:1, :].reshape(batch, hidden)
    pooled = jnp.tanh(jnp.dot(cls.astype(bf16), pw_ref[...],
                              preferred_element_type=jnp.float32) + pb_ref[...])
    logits = jnp.dot(pooled.astype(bf16), cw_ref[...],
                     preferred_element_type=jnp.float32) + cb_ref[...]
    o_ref[...] = logits


# ----------------------------------------------------------------------------
# Forward pass wrapper (gather glue in JAX, everything else one Pallas kernel)
# ----------------------------------------------------------------------------
def bert_forward(params, ids):
    # TODO(synk): BertTokenizer.encode / pretrained checkpoint loading have no
    # Pallas/JAX equivalent; padded token ids are the kernel input (pad id 0).
    B, S = ids.shape
    H, NH, Dh, L, NL = HIDDEN, N_HEADS, HEAD_DIM, N_LAYERS, N_LABELS
    bf16 = jnp.bfloat16

    # attention_mask = X_padded > 0 ; additive key bias computed once here
    mask_bias = jnp.where(ids > 0, 0.0, -1e9).astype(jnp.float32).reshape(B, 1, S)

    # embedding gather stays in XLA; sum + LN is fused into the kernel
    we = params["word_emb"][ids]                                     # (B, S, H)
    pos = params["pos_emb"][:S].reshape(1, S, H)
    typ = params["type_emb"][0].reshape(1, 1, H)

    args = [
        we, pos, typ,
        params["emb_ln_g"].reshape(1, 1, H), params["emb_ln_b"].reshape(1, 1, H),
        mask_bias,
        params["wq"].astype(bf16), params["wk"].astype(bf16), params["wv"].astype(bf16),
        params["bq"], params["bk"], params["bv"],
        params["wo"].astype(bf16), params["bo"],
        params["ln1_g"], params["ln1_b"],
        params["w1"].astype(bf16), params["b1"],
        params["w2"].astype(bf16), params["b2"],
        params["ln2_g"], params["ln2_b"],
        params["pool_w"].astype(bf16), params["pool_b"].reshape(1, H),
        params["cls_w"].astype(bf16), params["cls_b"].reshape(1, NL),
    ]

    kern = functools.partial(
        _bert_fused_kernel, batch=B, seq=S, hidden=H, n_heads=NH,
        head_dim=Dh, n_layers=L, scale=1.0 / math.sqrt(Dh))

    def full_spec(a):
        nd = a.ndim
        return pl.BlockSpec(a.shape, lambda i, _nd=nd: (0,) * _nd)

    return pl.pallas_call(
        kern,
        out_shape=jax.ShapeDtypeStruct((B, NL), jnp.float32),
        grid=(1,),
        in_specs=[full_spec(a) for a in args],
        out_specs=pl.BlockSpec((B, NL), lambda i: (0, 0)),
        compiler_params=pltpu.CompilerParams(dimension_semantics=("arbitrary",)),
    )(*args)


# ----------------------------------------------------------------------------
# Deterministic parameter init (layer weights stacked; Q/K/V/O pre-split per head)
# ----------------------------------------------------------------------------
def init_params(key):
    def nrm(k, shape):
        return 0.02 * jax.random.normal(k, shape, dtype=jnp.float32)

    H, NH, Dh, L, F, NL = HIDDEN, N_HEADS, HEAD_DIM, N_LAYERS, FFN, N_LABELS
    ks = jax.random.split(key, 11)
    return {
        "word_emb": nrm(ks[0], (VOCAB, H)),
        "pos_emb": nrm(ks[1], (MAX_POS, H)),
        "type_emb": nrm(ks[2], (2, H)),
        "emb_ln_g": jnp.ones((H,), jnp.float32),
        "emb_ln_b": jnp.zeros((H,), jnp.float32),
        # encoder layers: leading layer axis; Q/K/V/output-proj pre-split per head
        "wq": nrm(ks[3], (L, NH, H, Dh)),
        "wk": nrm(ks[4], (L, NH, H, Dh)),
        "wv": nrm(ks[5], (L, NH, H, Dh)),
        "bq": jnp.zeros((L, NH, 1, Dh), jnp.float32),
        "bk": jnp.zeros((L, NH, 1, Dh), jnp.float32),
        "bv": jnp.zeros((L, NH, 1, Dh), jnp.float32),
        "wo": nrm(ks[6], (L, NH, Dh, H)),
        "bo": jnp.zeros((L, 1, H), jnp.float32),
        "ln1_g": jnp.ones((L, 1, H), jnp.float32),
        "ln1_b": jnp.zeros((L, 1, H), jnp.float32),
        "w1": nrm(ks[7], (L, H, F)),
        "b1": jnp.zeros((L, 1, F), jnp.float32),
        "w2": nrm(ks[8], (L, F, H)),
        "b2": jnp.zeros((L, 1, H), jnp.float32),
        "ln2_g": jnp.ones((L, 1, H), jnp.float32),
        "ln2_b": jnp.zeros((L, 1, H), jnp.float32),
        "pool_w": nrm(ks[9], (H, H)),
        "pool_b": jnp.zeros((H,), jnp.float32),
        "cls_w": nrm(ks[10], (H, NL)),
        "cls_b": jnp.zeros((NL,), jnp.float32),
    }


if __name__ == "__main__":
    key = jax.random.PRNGKey(0)
    pk, ik = jax.random.split(key)
    params = init_params(pk)

    B, S = 2, 8
    ids = jax.random.randint(ik, (B, S), 1, VOCAB, dtype=jnp.int32)
    ids = ids.at[0, 6:].set(0)   # simulate pad_sequence padding (pad id 0)

    logits = jax.jit(bert_forward)(params, ids)
    jax.block_until_ready(logits)
    assert logits.shape == (B, N_LABELS) and logits.dtype == jnp.float32
    print("KERNEL_OK")
</pallas_src>

<mosaic_0001>
module attributes {stable_mosaic.version = 11 : i64} {
  func.func @_bert_fused_kernel(%arg0: i32, %arg1: memref<2x8x32xf32, #tpu.memory_space<vmem>>, %arg2: memref<1x8x32xf32, #tpu.memory_space<vmem>>, %arg3: memref<1x1x32xf32, #tpu.memory_space<vmem>>, %arg4: memref<1x1x32xf32, #tpu.memory_space<vmem>>, %arg5: memref<1x1x32xf32, #tpu.memory_space<vmem>>, %arg6: memref<2x1x8xf32, #tpu.memory_space<vmem>>, %arg7: memref<2x2x32x16xbf16, #tpu.memory_space<vmem>>, %arg8: memref<2x2x32x16xbf16, #tpu.memory_space<vmem>>, %arg9: memref<2x2x32x16xbf16, #tpu.memory_space<vmem>>, %arg10: memref<2x2x1x16xf32, #tpu.memory_space<vmem>>, %arg11: memref<2x2x1x16xf32, #tpu.memory_space<vmem>>, %arg12: memref<2x2x1x16xf32, #tpu.memory_space<vmem>>, %arg13: memref<2x2x16x32xbf16, #tpu.memory_space<vmem>>, %arg14: memref<2x1x32xf32, #tpu.memory_space<vmem>>, %arg15: memref<2x1x32xf32, #tpu.memory_space<vmem>>, %arg16: memref<2x1x32xf32, #tpu.memory_space<vmem>>, %arg17: memref<2x32x64xbf16, #tpu.memory_space<vmem>>, %arg18: memref<2x1x64xf32, #tpu.memory_space<vmem>>, %arg19: memref<2x64x32xbf16, #tpu.memory_space<vmem>>, %arg20: memref<2x1x32xf32, #tpu.memory_space<vmem>>, %arg21: memref<2x1x32xf32, #tpu.memory_space<vmem>>, %arg22: memref<2x1x32xf32, #tpu.memory_space<vmem>>, %arg23: memref<32x32xbf16, #tpu.memory_space<vmem>>, %arg24: memref<1x32xf32, #tpu.memory_space<vmem>>, %arg25: memref<32x3xbf16, #tpu.memory_space<vmem>>, %arg26: memref<1x3xf32, #tpu.memory_space<vmem>>, %arg27: memref<2x3xf32, #tpu.memory_space<vmem>>) attributes {dimension_semantics = [#tpu.dimension_semantics<arbitrary>], iteration_bounds = array<i64: 1>, scalar_prefetch = 0 : i64, scratch_operands = 0 : i64, tpu.core_type = #tpu.core_type<tc>, window_params = [{pipeline_mode = #tpu.pipeline_mode<synchronous>, transform_indices = @transform_0, window_bounds = array<i64: 2, 8, 32>}, {pipeline_mode = #tpu.pipeline_mode<synchronous>, transform_indices = @transform_1, window_bounds = array<i64: 1, 8, 32>}, {pipeline_mode = #tpu.pipeline_mode<synchronous>, transform_indices = @transform_2, window_bounds = array<i64: 1, 1, 32>}, {pipeline_mode = #tpu.pipeline_mode<synchronous>, transform_indices = @transform_3, window_bounds = array<i64: 1, 1, 32>}, {pipeline_mode = #tpu.pipeline_mode<synchronous>, transform_indices = @transform_4, window_bounds = array<i64: 1, 1, 32>}, {pipeline_mode = #tpu.pipeline_mode<synchronous>, transform_indices = @transform_5, window_bounds = array<i64: 2, 1, 8>}, {pipeline_mode = #tpu.pipeline_mode<synchronous>, transform_indices = @transform_6, window_bounds = array<i64: 2, 2, 32, 16>}, {pipeline_mode = #tpu.pipeline_mode<synchronous>, transform_indices = @transform_7, window_bounds = array<i64: 2, 2, 32, 16>}, {pipeline_mode = #tpu.pipeline_mode<synchronous>, transform_indices = @transform_8, window_bounds = array<i64: 2, 2, 32, 16>}, {pipeline_mode = #tpu.pipeline_mode<synchronous>, transform_indices = @transform_9, window_bounds = array<i64: 2, 2, 1, 16>}, {pipeline_mode = #tpu.pipeline_mode<synchronous>, transform_indices = @transform_10, window_bounds = array<i64: 2, 2, 1, 16>}, {pipeline_mode = #tpu.pipeline_mode<synchronous>, transform_indices = @transform_11, window_bounds = array<i64: 2, 2, 1, 16>}, {pipeline_mode = #tpu.pipeline_mode<synchronous>, transform_indices = @transform_12, window_bounds = array<i64: 2, 2, 16, 32>}, {pipeline_mode = #tpu.pipeline_mode<synchronous>, transform_indices = @transform_13, window_bounds = array<i64: 2, 1, 32>}, {pipeline_mode = #tpu.pipeline_mode<synchronous>, transform_indices = @transform_14, window_bounds = array<i64: 2, 1, 32>}, {pipeline_mode = #tpu.pipeline_mode<synchronous>, transform_indices = @transform_15, window_bounds = array<i64: 2, 1, 32>}, {pipeline_mode = #tpu.pipeline_mode<synchronous>, transform_indices = @transform_16, window_bounds = array<i64: 2, 32, 64>}, {pipeline_mode = #tpu.pipeline_mode<synchronous>, transform_indices = @transform_17, window_bounds = array<i64: 2, 1, 64>}, {pipeline_mode = #tpu.pipeline_mode<synchronous>, transform_indices = @transform_18, window_bounds = array<i64: 2, 64, 32>}, {pipeline_mode = #tpu.pipeline_mode<synchronous>, transform_indices = @transform_19, window_bounds = array<i64: 2, 1, 32>}, {pipeline_mode = #tpu.pipeline_mode<synchronous>, transform_indices = @transform_20, window_bounds = array<i64: 2, 1, 32>}, {pipeline_mode = #tpu.pipeline_mode<synchronous>, transform_indices = @transform_21, window_bounds = array<i64: 2, 1, 32>}, {pipeline_mode = #tpu.pipeline_mode<synchronous>, transform_indices = @transform_22, window_bounds = array<i64: 32, 32>}, {pipeline_mode = #tpu.pipeline_mode<synchronous>, transform_indices = @transform_23, window_bounds = array<i64: 1, 32>}, {pipeline_mode = #tpu.pipeline_mode<synchronous>, transform_indices = @transform_24, window_bounds = array<i64: 32, 3>}, {pipeline_mode = #tpu.pipeline_mode<synchronous>, transform_indices = @transform_25, window_bounds = array<i64: 1, 3>}, {pipeline_mode = #tpu.pipeline_mode<synchronous>, transform_indices = @transform_26, window_bounds = array<i64: 2, 3>}]} {
    %c0 = arith.constant 0 : index
    %c0_0 = arith.constant 0 : index
    %c0_1 = arith.constant 0 : index
    %0 = vector.load %arg1[%c0, %c0_0, %c0_1] : memref<2x8x32xf32, #tpu.memory_space<vmem>>, vector<2x8x32xf32>
    %c0_2 = arith.constant 0 : index
    %c0_3 = arith.constant 0 : index
    %c0_4 = arith.constant 0 : index
    %1 = vector.load %arg2[%c0_2, %c0_3, %c0_4] : memref<1x8x32xf32, #tpu.memory_space<vmem>>, vector<1x8x32xf32>
    %2 = vector.broadcast %1 : vector<1x8x32xf32> to vector<2x8x32xf32>
    %3 = arith.addf %0, %2 : vector<2x8x32xf32>
    %c0_5 = arith.constant 0 : index
    %c0_6 = arith.constant 0 : index
    %c0_7 = arith.constant 0 : index
    %4 = vector.load %arg3[%c0_5, %c0_6, %c0_7] : memref<1x1x32xf32, #tpu.memory_space<vmem>>, vector<1x1x32xf32>
    %5 = vector.broadcast %4 : vector<1x1x32xf32> to vector<2x8x32xf32>
    %6 = arith.addf %3, %5 : vector<2x8x32xf32>
    %c0_8 = arith.constant 0 : index
    %c0_9 = arith.constant 0 : index
    %c0_10 = arith.constant 0 : index
    %7 = vector.load %arg4[%c0_8, %c0_9, %c0_10] : memref<1x1x32xf32, #tpu.memory_space<vmem>>, vector<1x1x32xf32>
    %c0_11 = arith.constant 0 : index
    %c0_12 = arith.constant 0 : index
    %c0_13 = arith.constant 0 : index
    %8 = vector.load %arg5[%c0_11, %c0_12, %c0_13] : memref<1x1x32xf32, #tpu.memory_space<vmem>>, vector<1x1x32xf32>
    %cst = arith.constant dense<0.000000e+00> : vector<2x8xf32>
    %9 = vector.multi_reduction <add>, %6, %cst [2] : vector<2x8x32xf32> to vector<2x8xf32>
    %10 = vector.shape_cast %9 : vector<2x8xf32> to vector<2x8x1xf32>
    %cst_14 = arith.constant 3.200000e+01 : f32
    %11 = vector.broadcast %cst_14 : f32 to vector<2x8x1xf32>
    %12 = arith.divf %10, %11 : vector<2x8x1xf32>
    %13 = vector.broadcast %12 : vector<2x8x1xf32> to vector<2x8x32xf32>
    %14 = arith.subf %6, %13 : vector<2x8x32xf32>
    %15 = arith.mulf %14, %14 : vector<2x8x32xf32>
    %cst_15 = arith.constant dense<0.000000e+00> : vector<2x8xf32>
    %16 = vector.multi_reduction <add>, %15, %cst_15 [2] : vector<2x8x32xf32> to vector<2x8xf32>
    %17 = vector.shape_cast %16 : vector<2x8xf32> to vector<2x8x1xf32>
    %cst_16 = arith.constant 3.200000e+01 : f32
    %18 = vector.broadcast %cst_16 : f32 to vector<2x8x1xf32>
    %19 = arith.divf %17, %18 : vector<2x8x1xf32>
    %cst_17 = arith.constant 9.99999996E-13 : f32
    %20 = vector.broadcast %cst_17 : f32 to vector<2x8x1xf32>
    %21 = arith.addf %19, %20 : vector<2x8x1xf32>
    %22 = math.rsqrt %21 : vector<2x8x1xf32>
    %23 = vector.broadcast %22 : vector<2x8x1xf32> to vector<2x8x32xf32>
    %24 = arith.mulf %14, %23 : vector<2x8x32xf32>
    %25 = vector.broadcast %7 : vector<1x1x32xf32> to vector<2x8x32xf32>
    %26 = arith.mulf %24, %25 : vector<2x8x32xf32>
    %27 = vector.broadcast %8 : vector<1x1x32xf32> to vector<2x8x32xf32>
    %28 = arith.addf %26, %27 : vector<2x8x32xf32>
    %29 = vector.shape_cast %28 : vector<2x8x32xf32> to vector<16x32xf32>
    %c0_18 = arith.constant 0 : index
    %c0_19 = arith.constant 0 : index
    %c0_20 = arith.constant 0 : index
    %30 = vector.load %arg6[%c0_18, %c0_19, %c0_20] : memref<2x1x8xf32, #tpu.memory_space<vmem>>, vector<2x1x8xf32>
    %31 = arith.truncf %29 : vector<16x32xf32> to vector<16x32xbf16>
    %cst_21 = arith.constant 0.000000e+00 : f32
    %32 = vector.broadcast %cst_21 : f32 to vector<16x32xf32>
    %c0_22 = arith.constant 0 : index
    %c0_23 = arith.constant 0 : index
    %c0_24 = arith.constant 0 : index
    %c0_25 = arith.constant 0 : index
    %33 = vector.load %arg7[%c0_22, %c0_23, %c0_24, %c0_25] : memref<2x2x32x16xbf16, #tpu.memory_space<vmem>>, vector<1x1x32x16xbf16>
    %34 = vector.shape_cast %33 : vector<1x1x32x16xbf16> to vector<32x16xbf16>
    %cst_26 = arith.constant dense<0.000000e+00> : vector<16x16xf32>
    %35 = tpu.matmul %31, %34, %cst_26 {dimension_numbers = #tpu.dot_dimension_numbers<[1], [0], [0], [1], [0, 0, 1, 1], [], []>} : vector<16x32xbf16>, vector<32x16xbf16>, vector<16x16xf32> -> vector<16x16xf32>
    %c0_27 = arith.constant 0 : index
    %c0_28 = arith.constant 0 : index
    %c0_29 = arith.constant 0 : index
    %c0_30 = arith.constant 0 : index
    %36 = vector.load %arg10[%c0_27, %c0_28, %c0_29, %c0_30] : memref<2x2x1x16xf32, #tpu.memory_space<vmem>>, vector<1x1x1x16xf32>
    %37 = vector.shape_cast %36 : vector<1x1x1x16xf32> to vector<1x16xf32>
    %38 = vector.broadcast %37 : vector<1x16xf32> to vector<16x16xf32>
    %39 = arith.addf %35, %38 : vector<16x16xf32>
    %c0_31 = arith.constant 0 : index
    %c0_32 = arith.constant 0 : index
    %c0_33 = arith.constant 0 : index
    %c0_34 = arith.constant 0 : index
    %40 = vector.load %arg8[%c0_31, %c0_32, %c0_33, %c0_34] : memref<2x2x32x16xbf16, #tpu.memory_space<vmem>>, vector<1x1x32x16xbf16>
    %41 = vector.shape_cast %40 : vector<1x1x32x16xbf16> to vector<32x16xbf16>
    %cst_35 = arith.constant dense<0.000000e+00> : vector<16x16xf32>
    %42 = tpu.matmul %31, %41, %cst_35 {dimension_numbers = #tpu.dot_dimension_numbers<[1], [0], [0], [1], [0, 0, 1, 1], [], []>} : vector<16x32xbf16>, vector<32x16xbf16>, vector<16x16xf32> -> vector<16x16xf32>
    %c0_36 = arith.constant 0 : index
    %c0_37 = arith.constant 0 : index
    %c0_38 = arith.constant 0 : index
    %c0_39 = arith.constant 0 : index
    %43 = vector.load %arg11[%c0_36, %c0_37, %c0_38, %c0_39] : memref<2x2x1x16xf32, #tpu.memory_space<vmem>>, vector<1x1x1x16xf32>
    %44 = vector.shape_cast %43 : vector<1x1x1x16xf32> to vector<1x16xf32>
    %45 = vector.broadcast %44 : vector<1x16xf32> to vector<16x16xf32>
    %46 = arith.addf %42, %45 : vector<16x16xf32>
    %c0_40 = arith.constant 0 : index
    %c0_41 = arith.constant 0 : index
    %c0_42 = arith.constant 0 : index
    %c0_43 = arith.constant 0 : index
    %47 = vector.load %arg9[%c0_40, %c0_41, %c0_42, %c0_43] : memref<2x2x32x16xbf16, #tpu.memory_space<vmem>>, vector<1x1x32x16xbf16>
    %48 = vector.shape_cast %47 : vector<1x1x32x16xbf16> to vector<32x16xbf16>
    %cst_44 = arith.constant dense<0.000000e+00> : vector<16x16xf32>
    %49 = tpu.matmul %31, %48, %cst_44 {dimension_numbers = #tpu.dot_dimension_numbers<[1], [0], [0], [1], [0, 0, 1, 1], [], []>} : vector<16x32xbf16>, vector<32x16xbf16>, vector<16x16xf32> -> vector<16x16xf32>
    %c0_45 = arith.constant 0 : index
    %c0_46 = arith.constant 0 : index
    %c0_47 = arith.constant 0 : index
    %c0_48 = arith.constant 0 : index
    %50 = vector.load %arg12[%c0_45, %c0_46, %c0_47, %c0_48] : memref<2x2x1x16xf32, #tpu.memory_space<vmem>>, vector<1x1x1x16xf32>
    %51 = vector.shape_cast %50 : vector<1x1x1x16xf32> to vector<1x16xf32>
    %52 = vector.broadcast %51 : vector<1x16xf32> to vector<16x16xf32>
    %53 = arith.addf %49, %52 : vector<16x16xf32>
    %54 = vector.shape_cast %39 : vector<16x16xf32> to vector<2x8x16xf32>
    %55 = arith.truncf %54 : vector<2x8x16xf32> to vector<2x8x16xbf16>
    %56 = vector.shape_cast %46 : vector<16x16xf32> to vector<2x8x16xf32>
    %57 = arith.truncf %56 : vector<2x8x16xf32> to vector<2x8x16xbf16>
    %58 = vector.shape_cast %53 : vector<16x16xf32> to vector<2x8x16xf32>
    %59 = arith.truncf %58 : vector<2x8x16xf32> to vector<2x8x16xbf16>
    "tpu.trace_start"() <{level = 10 : i32, message = "bqd,bkd->bqk"}> : () -> ()
    %cst_49 = arith.constant dense<0.000000e+00> : vector<2x8x8xf32>
    %60 = tpu.matmul %55, %57, %cst_49 {dimension_numbers = #tpu.dot_dimension_numbers<[2], [2], [1], [1], [0, 0, 0, 1, 1, 1], [0], [0]>} : vector<2x8x16xbf16>, vector<2x8x16xbf16>, vector<2x8x8xf32> -> vector<2x8x8xf32>
    "tpu.trace_stop"() : () -> ()
    %cst_50 = arith.constant 2.500000e-01 : f32
    %61 = vector.broadcast %cst_50 : f32 to vector<2x8x8xf32>
    %62 = arith.mulf %60, %61 : vector<2x8x8xf32>
    %63 = vector.broadcast %30 : vector<2x1x8xf32> to vector<2x8x8xf32>
    %64 = arith.addf %62, %63 : vector<2x8x8xf32>
    %cst_51 = arith.constant dense<0xFF800000> : vector<2x8xf32>
    %65 = vector.multi_reduction <maximumf>, %64, %cst_51 [2] : vector<2x8x8xf32> to vector<2x8xf32>
    %66 = vector.shape_cast %65 : vector<2x8xf32> to vector<2x8x1xf32>
    %67 = vector.broadcast %66 : vector<2x8x1xf32> to vector<2x8x8xf32>
    %68 = arith.subf %64, %67 : vector<2x8x8xf32>
    %69 = math.exp %68 : vector<2x8x8xf32>
    %cst_52 = arith.constant dense<0.000000e+00> : vector<2x8xf32>
    %70 = vector.multi_reduction <add>, %69, %cst_52 [2] : vector<2x8x8xf32> to vector<2x8xf32>
    %71 = vector.shape_cast %70 : vector<2x8xf32> to vector<2x8x1xf32>
    %72 = tpu.reciprocal %71 {approx = true} : vector<2x8x1xf32> -> vector<2x8x1xf32>
    %73 = vector.broadcast %72 : vector<2x8x1xf32> to vector<2x8x8xf32>
    %74 = arith.mulf %69, %73 : vector<2x8x8xf32>
    %75 = arith.truncf %74 : vector<2x8x8xf32> to vector<2x8x8xbf16>
    "tpu.trace_start"() <{level = 10 : i32, message = "bqk,bkd->bqd"}> : () -> ()
    %cst_53 = arith.constant dense<0.000000e+00> : vector<2x8x16xf32>
    %76 = tpu.matmul %75, %59, %cst_53 {dimension_numbers = #tpu.dot_dimension_numbers<[2], [1], [1], [2], [0, 0, 0, 1, 1, 2], [0], [0]>} : vector<2x8x8xbf16>, vector<2x8x16xbf16>, vector<2x8x16xf32> -> vector<2x8x16xf32>
    "tpu.trace_stop"() : () -> ()
    %77 = vector.shape_cast %76 : vector<2x8x16xf32> to vector<16x16xf32>
    %78 = arith.truncf %77 : vector<16x16xf32> to vector<16x16xbf16>
    %c0_54 = arith.constant 0 : index
    %c0_55 = arith.constant 0 : index
    %c0_56 = arith.constant 0 : index
    %c0_57 = arith.constant 0 : index
    %79 = vector.load %arg13[%c0_54, %c0_55, %c0_56, %c0_57] : memref<2x2x16x32xbf16, #tpu.memory_space<vmem>>, vector<1x1x16x32xbf16>
    %80 = vector.shape_cast %79 : vector<1x1x16x32xbf16> to vector<16x32xbf16>
    %cst_58 = arith.constant dense<0.000000e+00> : vector<16x32xf32>
    %81 = tpu.matmul %78, %80, %cst_58 {dimension_numbers = #tpu.dot_dimension_numbers<[1], [0], [0], [1], [0, 0, 1, 1], [], []>} : vector<16x16xbf16>, vector<16x32xbf16>, vector<16x32xf32> -> vector<16x32xf32>
    %82 = arith.addf %32, %81 : vector<16x32xf32>
    %c0_59 = arith.constant 0 : index
    %c1 = arith.constant 1 : index
    %c0_60 = arith.constant 0 : index
    %c0_61 = arith.constant 0 : index
    %83 = vector.load %arg7[%c0_59, %c1, %c0_60, %c0_61] : memref<2x2x32x16xbf16, #tpu.memory_space<vmem>>, vector<1x1x32x16xbf16>
    %84 = vector.shape_cast %83 : vector<1x1x32x16xbf16> to vector<32x16xbf16>
    %cst_62 = arith.constant dense<0.000000e+00> : vector<16x16xf32>
    %85 = tpu.matmul %31, %84, %cst_62 {dimension_numbers = #tpu.dot_dimension_numbers<[1], [0], [0], [1], [0, 0, 1, 1], [], []>} : vector<16x32xbf16>, vector<32x16xbf16>, vector<16x16xf32> -> vector<16x16xf32>
    %c0_63 = arith.constant 0 : index
    %c1_64 = arith.constant 1 : index
    %c0_65 = arith.constant 0 : index
    %c0_66 = arith.constant 0 : index
    %86 = vector.load %arg10[%c0_63, %c1_64, %c0_65, %c0_66] : memref<2x2x1x16xf32, #tpu.memory_space<vmem>>, vector<1x1x1x16xf32>
    %87 = vector.shape_cast %86 : vector<1x1x1x16xf32> to vector<1x16xf32>
    %88 = vector.broadcast %87 : vector<1x16xf32> to vector<16x16xf32>
    %89 = arith.addf %85, %88 : vector<16x16xf32>
    %c0_67 = arith.constant 0 : index
    %c1_68 = arith.constant 1 : index
    %c0_69 = arith.constant 0 : index
    %c0_70 = arith.constant 0 : index
    %90 = vector.load %arg8[%c0_67, %c1_68, %c0_69, %c0_70] : memref<2x2x32x16xbf16, #tpu.memory_space<vmem>>, vector<1x1x32x16xbf16>
    %91 = vector.shape_cast %90 : vector<1x1x32x16xbf16> to vector<32x16xbf16>
    %cst_71 = arith.constant dense<0.000000e+00> : vector<16x16xf32>
    %92 = tpu.matmul %31, %91, %cst_71 {dimension_numbers = #tpu.dot_dimension_numbers<[1], [0], [0], [1], [0, 0, 1, 1], [], []>} : vector<16x32xbf16>, vector<32x16xbf16>, vector<16x16xf32> -> vector<16x16xf32>
    %c0_72 = arith.constant 0 : index
    %c1_73 = arith.constant 1 : index
    %c0_74 = arith.constant 0 : index
    %c0_75 = arith.constant 0 : index
    %93 = vector.load %arg11[%c0_72, %c1_73, %c0_74, %c0_75] : memref<2x2x1x16xf32, #tpu.memory_space<vmem>>, vector<1x1x1x16xf32>
    %94 = vector.shape_cast %93 : vector<1x1x1x16xf32> to vector<1x16xf32>
    %95 = vector.broadcast %94 : vector<1x16xf32> to vector<16x16xf32>
    %96 = arith.addf %92, %95 : vector<16x16xf32>
    %c0_76 = arith.constant 0 : index
    %c1_77 = arith.constant 1 : index
    %c0_78 = arith.constant 0 : index
    %c0_79 = arith.constant 0 : index
    %97 = vector.load %arg9[%c0_76, %c1_77, %c0_78, %c0_79] : memref<2x2x32x16xbf16, #tpu.memory_space<vmem>>, vector<1x1x32x16xbf16>
    %98 = vector.shape_cast %97 : vector<1x1x32x16xbf16> to vector<32x16xbf16>
    %cst_80 = arith.constant dense<0.000000e+00> : vector<16x16xf32>
    %99 = tpu.matmul %31, %98, %cst_80 {dimension_numbers = #tpu.dot_dimension_numbers<[1], [0], [0], [1], [0, 0, 1, 1], [], []>} : vector<16x32xbf16>, vector<32x16xbf16>, vector<16x16xf32> -> vector<16x16xf32>
    %c0_81 = arith.constant 0 : index
    %c1_82 = arith.constant 1 : index
    %c0_83 = arith.constant 0 : index
    %c0_84 = arith.constant 0 : index
    %100 = vector.load %arg12[%c0_81, %c1_82, %c0_83, %c0_84] : memref<2x2x1x16xf32, #tpu.memory_space<vmem>>, vector<1x1x1x16xf32>
    %101 = vector.shape_cast %100 : vector<1x1x1x16xf32> to vector<1x16xf32>
    %102 = vector.broadcast %101 : vector<1x16xf32> to vector<16x16xf32>
    %103 = arith.addf %99, %102 : vector<16x16xf32>
    %104 = vector.shape_cast %89 : vector<16x16xf32> to vector<2x8x16xf32>
    %105 = arith.truncf %104 : vector<2x8x16xf32> to vector<2x8x16xbf16>
    %106 = vector.shape_cast %96 : vector<16x16xf32> to vector<2x8x16xf32>
    %107 = arith.truncf %106 : vector<2x8x16xf32> to vector<2x8x16xbf16>
    %108 = vector.shape_cast %103 : vector<16x16xf32> to vector<2x8x16xf32>
    %109 = arith.truncf %108 : vector<2x8x16xf32> to vector<2x8x16xbf16>
    "tpu.trace_start"() <{level = 10 : i32, message = "bqd,bkd->bqk"}> : () -> ()
    %cst_85 = arith.constant dense<0.000000e+00> : vector<2x8x8xf32>
    %110 = tpu.matmul %105, %107, %cst_85 {dimension_numbers = #tpu.dot_dimension_numbers<[2], [2], [1], [1], [0, 0, 0, 1, 1, 1], [0], [0]>} : vector<2x8x16xbf16>, vector<2x8x16xbf16>, vector<2x8x8xf32> -> vector<2x8x8xf32>
    "tpu.trace_stop"() : () -> ()
    %cst_86 = arith.constant 2.500000e-01 : f32
    %111 = vector.broadcast %cst_86 : f32 to vector<2x8x8xf32>
    %112 = arith.mulf %110, %111 : vector<2x8x8xf32>
    %113 = vector.broadcast %30 : vector<2x1x8xf32> to vector<2x8x8xf32>
    %114 = arith.addf %112, %113 : vector<2x8x8xf32>
    %cst_87 = arith.constant dense<0xFF800000> : vector<2x8xf32>
    %115 = vector.multi_reduction <maximumf>, %114, %cst_87 [2] : vector<2x8x8xf32> to vector<2x8xf32>
    %116 = vector.shape_cast %115 : vector<2x8xf32> to vector<2x8x1xf32>
    %117 = vector.broadcast %116 : vector<2x8x1xf32> to vector<2x8x8xf32>
    %118 = arith.subf %114, %117 : vector<2x8x8xf32>
    %119 = math.exp %118 : vector<2x8x8xf32>
    %cst_88 = arith.constant dense<0.000000e+00> : vector<2x8xf32>
    %120 = vector.multi_reduction <add>, %119, %cst_88 [2] : vector<2x8x8xf32> to vector<2x8xf32>
    %121 = vector.shape_cast %120 : vector<2x8xf32> to vector<2x8x1xf32>
    %122 = tpu.reciprocal %121 {approx = true} : vector<2x8x1xf32> -> vector<2x8x1xf32>
    %123 = vector.broadcast %122 : vector<2x8x1xf32> to vector<2x8x8xf32>
    %124 = arith.mulf %119, %123 : vector<2x8x8xf32>
    %125 = arith.truncf %124 : vector<2x8x8xf32> to vector<2x8x8xbf16>
    "tpu.trace_start"() <{level = 10 : i32, message = "bqk,bkd->bqd"}> : () -> ()
    %cst_89 = arith.constant dense<0.000000e+00> : vector<2x8x16xf32>
    %126 = tpu.matmul %125, %109, %cst_89 {dimension_numbers = #tpu.dot_dimension_numbers<[2], [1], [1], [2], [0, 0, 0, 1, 1, 2], [0], [0]>} : vector<2x8x8xbf16>, vector<2x8x16xbf16>, vector<2x8x16xf32> -> vector<2x8x16xf32>
    "tpu.trace_stop"() : () -> ()
    %127 = vector.shape_cast %126 : vector<2x8x16xf32> to vector<16x16xf32>
    %128 = arith.truncf %127 : vector<16x16xf32> to vector<16x16xbf16>
    %c0_90 = arith.constant 0 : index
    %c1_91 = arith.constant 1 : index
    %c0_92 = arith.constant 0 : index
    %c0_93 = arith.constant 0 : index
    %129 = vector.load %arg13[%c0_90, %c1_91, %c0_92, %c0_93] : memref<2x2x16x32xbf16, #tpu.memory_space<vmem>>, vector<1x1x16x32xbf16>
    %130 = vector.shape_cast %129 : vector<1x1x16x32xbf16> to vector<16x32xbf16>
    %cst_94 = arith.constant dense<0.000000e+00> : vector<16x32xf32>
    %131 = tpu.matmul %128, %130, %cst_94 {dimension_numbers = #tpu.dot_dimension_numbers<[1], [0], [0], [1], [0, 0, 1, 1], [], []>} : vector<16x16xbf16>, vector<16x32xbf16>, vector<16x32xf32> -> vector<16x32xf32>
    %132 = arith.addf %82, %131 : vector<16x32xf32>
    %c0_95 = arith.constant 0 : index
    %c0_96 = arith.constant 0 : index
    %c0_97 = arith.constant 0 : index
    %133 = vector.load %arg14[%c0_95, %c0_96, %c0_97] : memref<2x1x32xf32, #tpu.memory_space<vmem>>, vector<1x1x32xf32>
    %134 = vector.shape_cast %133 : vector<1x1x32xf32> to vector<1x32xf32>
    %135 = vector.broadcast %134 : vector<1x32xf32> to vector<16x32xf32>
    %136 = arith.addf %132, %135 : vector<16x32xf32>
    %137 = arith.addf %29, %136 : vector<16x32xf32>
    %c0_98 = arith.constant 0 : index
    %c0_99 = arith.constant 0 : index
    %c0_100 = arith.constant 0 : index
    %138 = vector.load %arg15[%c0_98, %c0_99, %c0_100] : memref<2x1x32xf32, #tpu.memory_space<vmem>>, vector<1x1x32xf32>
    %139 = vector.shape_cast %138 : vector<1x1x32xf32> to vector<1x32xf32>
    %c0_101 = arith.constant 0 : index
    %c0_102 = arith.constant 0 : index
    %c0_103 = arith.constant 0 : index
    %140 = vector.load %arg16[%c0_101, %c0_102, %c0_103] : memref<2x1x32xf32, #tpu.memory_space<vmem>>, vector<1x1x32xf32>
    %141 = vector.shape_cast %140 : vector<1x1x32xf32> to vector<1x32xf32>
    %cst_104 = arith.constant dense<0.000000e+00> : vector<16xf32>
    %142 = vector.multi_reduction <add>, %137, %cst_104 [1] : vector<16x32xf32> to vector<16xf32>
    %143 = vector.shape_cast %142 : vector<16xf32> to vector<16x1xf32>
    %cst_105 = arith.constant 3.200000e+01 : f32
    %144 = vector.broadcast %cst_105 : f32 to vector<16x1xf32>
    %145 = arith.divf %143, %144 : vector<16x1xf32>
    %146 = vector.broadcast %145 : vector<16x1xf32> to vector<16x32xf32>
    %147 = arith.subf %137, %146 : vector<16x32xf32>
    %148 = arith.mulf %147, %147 : vector<16x32xf32>
    %cst_106 = arith.constant dense<0.000000e+00> : vector<16xf32>
    %149 = vector.multi_reduction <add>, %148, %cst_106 [1] : vector<16x32xf32> to vector<16xf32>
    %150 = vector.shape_cast %149 : vector<16xf32> to vector<16x1xf32>
    %cst_107 = arith.constant 3.200000e+01 : f32
    %151 = vector.broadcast %cst_107 : f32 to vector<16x1xf32>
    %152 = arith.divf %150, %151 : vector<16x1xf32>
    %cst_108 = arith.constant 9.99999996E-13 : f32
    %153 = vector.broadcast %cst_108 : f32 to vector<16x1xf32>
    %154 = arith.addf %152, %153 : vector<16x1xf32>
    %155 = math.rsqrt %154 : vector<16x1xf32>
    %156 = vector.broadcast %155 : vector<16x1xf32> to vector<16x32xf32>
    %157 = arith.mulf %147, %156 : vector<16x32xf32>
    %158 = vector.broadcast %139 : vector<1x32xf32> to vector<16x32xf32>
    %159 = arith.mulf %157, %158 : vector<16x32xf32>
    %160 = vector.broadcast %141 : vector<1x32xf32> to vector<16x32xf32>
    %161 = arith.addf %159, %160 : vector<16x32xf32>
    %162 = arith.truncf %161 : vector<16x32xf32> to vector<16x32xbf16>
    %c0_109 = arith.constant 0 : index
    %c0_110 = arith.constant 0 : index
    %c0_111 = arith.constant 0 : index
    %163 = vector.load %arg17[%c0_109, %c0_110, %c0_111] : memref<2x32x64xbf16, #tpu.memory_space<vmem>>, vector<1x32x64xbf16>
    %164 = vector.shape_cast %163 : vector<1x32x64xbf16> to vector<32x64xbf16>
    %cst_112 = arith.constant dense<0.000000e+00> : vector<16x64xf32>
    %165 = tpu.matmul %162, %164, %cst_112 {dimension_numbers = #tpu.dot_dimension_numbers<[1], [0], [0], [1], [0, 0, 1, 1], [], []>} : vector<16x32xbf16>, vector<32x64xbf16>, vector<16x64xf32> -> vector<16x64xf32>
    %c0_113 = arith.constant 0 : index
    %c0_114 = arith.constant 0 : index
    %c0_115 = arith.constant 0 : index
    %166 = vector.load %arg18[%c0_113, %c0_114, %c0_115] : memref<2x1x64xf32, #tpu.memory_space<vmem>>, vector<1x1x64xf32>
    %167 = vector.shape_cast %166 : vector<1x1x64xf32> to vector<1x64xf32>
    %168 = vector.broadcast %167 : vector<1x64xf32> to vector<16x64xf32>
    %169 = arith.addf %165, %168 : vector<16x64xf32>
    %cst_116 = arith.constant 5.000000e-01 : f32
    %170 = vector.broadcast %cst_116 : f32 to vector<16x64xf32>
    %171 = arith.mulf %170, %169 : vector<16x64xf32>
    %cst_117 = arith.constant 4.471500e-02 : f32
    %172 = vector.broadcast %cst_117 : f32 to vector<16x64xf32>
    %173 = arith.mulf %172, %169 : vector<16x64xf32>
    %174 = arith.mulf %173, %169 : vector<16x64xf32>
    %175 = arith.mulf %174, %169 : vector<16x64xf32>
    %176 = arith.addf %169, %175 : vector<16x64xf32>
    %cst_118 = arith.constant 0.797884583 : f32
    %177 = vector.broadcast %cst_118 : f32 to vector<16x64xf32>
    %178 = arith.mulf %177, %176 : vector<16x64xf32>
    %179 = math.tanh %178 : vector<16x64xf32>
    %cst_119 = arith.constant 1.000000e+00 : f32
    %180 = vector.broadcast %cst_119 : f32 to vector<16x64xf32>
    %181 = arith.addf %180, %179 : vector<16x64xf32>
    %182 = arith.mulf %171, %181 : vector<16x64xf32>
    %183 = arith.truncf %182 : vector<16x64xf32> to vector<16x64xbf16>
    %c0_120 = arith.constant 0 : index
    %c0_121 = arith.constant 0 : index
    %c0_122 = arith.constant 0 : index
    %184 = vector.load %arg19[%c0_120, %c0_121, %c0_122] : memref<2x64x32xbf16, #tpu.memory_space<vmem>>, vector<1x64x32xbf16>
    %185 = vector.shape_cast %184 : vector<1x64x32xbf16> to vector<64x32xbf16>
    %cst_123 = arith.constant dense<0.000000e+00> : vector<16x32xf32>
    %186 = tpu.matmul %183, %185, %cst_123 {dimension_numbers = #tpu.dot_dimension_numbers<[1], [0], [0], [1], [0, 0, 1, 1], [], []>} : vector<16x64xbf16>, vector<64x32xbf16>, vector<16x32xf32> -> vector<16x32xf32>
    %c0_124 = arith.constant 0 : index
    %c0_125 = arith.constant 0 : index
    %c0_126 = arith.constant 0 : index
    %187 = vector.load %arg20[%c0_124, %c0_125, %c0_126] : memref<2x1x32xf32, #tpu.memory_space<vmem>>, vector<1x1x32xf32>
    %188 = vector.shape_cast %187 : vector<1x1x32xf32> to vector<1x32xf32>
    %189 = vector.broadcast %188 : vector<1x32xf32> to vector<16x32xf32>
    %190 = arith.addf %186, %189 : vector<16x32xf32>
    %191 = arith.addf %161, %190 : vector<16x32xf32>
    %c0_127 = arith.constant 0 : index
    %c0_128 = arith.constant 0 : index
    %c0_129 = arith.constant 0 : index
    %192 = vector.load %arg21[%c0_127, %c0_128, %c0_129] : memref<2x1x32xf32, #tpu.memory_space<vmem>>, vector<1x1x32xf32>
    %193 = vector.shape_cast %192 : vector<1x1x32xf32> to vector<1x32xf32>
    %c0_130 = arith.constant 0 : index
    %c0_131 = arith.constant 0 : index
    %c0_132 = arith.constant 0 : index
    %194 = vector.load %arg22[%c0_130, %c0_131, %c0_132] : memref<2x1x32xf32, #tpu.memory_space<vmem>>, vector<1x1x32xf32>
    %195 = vector.shape_cast %194 : vector<1x1x32xf32> to vector<1x32xf32>
    %cst_133 = arith.constant dense<0.000000e+00> : vector<16xf32>
    %196 = vector.multi_reduction <add>, %191, %cst_133 [1] : vector<16x32xf32> to vector<16xf32>
    %197 = vector.shape_cast %196 : vector<16xf32> to vector<16x1xf32>
    %cst_134 = arith.constant 3.200000e+01 : f32
    %198 = vector.broadcast %cst_134 : f32 to vector<16x1xf32>
    %199 = arith.divf %197, %198 : vector<16x1xf32>
    %200 = vector.broadcast %199 : vector<16x1xf32> to vector<16x32xf32>
    %201 = arith.subf %191, %200 : vector<16x32xf32>
    %202 = arith.mulf %201, %201 : vector<16x32xf32>
    %cst_135 = arith.constant dense<0.000000e+00> : vector<16xf32>
    %203 = vector.multi_reduction <add>, %202, %cst_135 [1] : vector<16x32xf32> to vector<16xf32>
    %204 = vector.shape_cast %203 : vector<16xf32> to vector<16x1xf32>
    %cst_136 = arith.constant 3.200000e+01 : f32
    %205 = vector.broadcast %cst_136 : f32 to vector<16x1xf32>
    %206 = arith.divf %204, %205 : vector<16x1xf32>
    %cst_137 = arith.constant 9.99999996E-13 : f32
    %207 = vector.broadcast %cst_137 : f32 to vector<16x1xf32>
    %208 = arith.addf %206, %207 : vector<16x1xf32>
    %209 = math.rsqrt %208 : vector<16x1xf32>
    %210 = vector.broadcast %209 : vector<16x1xf32> to vector<16x32xf32>
    %211 = arith.mulf %201, %210 : vector<16x32xf32>
    %212 = vector.broadcast %193 : vector<1x32xf32> to vector<16x32xf32>
    %213 = arith.mulf %211, %212 : vector<16x32xf32>
    %214 = vector.broadcast %195 : vector<1x32xf32> to vector<16x32xf32>
    %215 = arith.addf %213, %214 : vector<16x32xf32>
    %216 = arith.truncf %215 : vector<16x32xf32> to vector<16x32xbf16>
    %cst_138 = arith.constant 0.000000e+00 : f32
    %217 = vector.broadcast %cst_138 : f32 to vector<16x32xf32>
    %c1_139 = arith.constant 1 : index
    %c0_140 = arith.constant 0 : index
    %c0_141 = arith.constant 0 : index
    %c0_142 = arith.constant 0 : index
    %218 = vector.load %arg7[%c1_139, %c0_140, %c0_141, %c0_142] : memref<2x2x32x16xbf16, #tpu.memory_space<vmem>>, vector<1x1x32x16xbf16>
    %219 = vector.shape_cast %218 : vector<1x1x32x16xbf16> to vector<32x16xbf16>
    %cst_143 = arith.constant dense<0.000000e+00> : vector<16x16xf32>
    %220 = tpu.matmul %216, %219, %cst_143 {dimension_numbers = #tpu.dot_dimension_numbers<[1], [0], [0], [1], [0, 0, 1, 1], [], []>} : vector<16x32xbf16>, vector<32x16xbf16>, vector<16x16xf32> -> vector<16x16xf32>
    %c1_144 = arith.constant 1 : index
    %c0_145 = arith.constant 0 : index
    %c0_146 = arith.constant 0 : index
    %c0_147 = arith.constant 0 : index
    %221 = vector.load %arg10[%c1_144, %c0_145, %c0_146, %c0_147] : memref<2x2x1x16xf32, #tpu.memory_space<vmem>>, vector<1x1x1x16xf32>
    %222 = vector.shape_cast %221 : vector<1x1x1x16xf32> to vector<1x16xf32>
    %223 = vector.broadcast %222 : vector<1x16xf32> to vector<16x16xf32>
    %224 = arith.addf %220, %223 : vector<16x16xf32>
    %c1_148 = arith.constant 1 : index
    %c0_149 = arith.constant 0 : index
    %c0_150 = arith.constant 0 : index
    %c0_151 = arith.constant 0 : index
    %225 = vector.load %arg8[%c1_148, %c0_149, %c0_150, %c0_151] : memref<2x2x32x16xbf16, #tpu.memory_space<vmem>>, vector<1x1x32x16xbf16>
    %226 = vector.shape_cast %225 : vector<1x1x32x16xbf16> to vector<32x16xbf16>
    %cst_152 = arith.constant dense<0.000000e+00> : vector<16x16xf32>
    %227 = tpu.matmul %216, %226, %cst_152 {dimension_numbers = #tpu.dot_dimension_numbers<[1], [0], [0], [1], [0, 0, 1, 1], [], []>} : vector<16x32xbf16>, vector<32x16xbf16>, vector<16x16xf32> -> vector<16x16xf32>
    %c1_153 = arith.constant 1 : index
    %c0_154 = arith.constant 0 : index
    %c0_155 = arith.constant 0 : index
    %c0_156 = arith.constant 0 : index
    %228 = vector.load %arg11[%c1_153, %c0_154, %c0_155, %c0_156] : memref<2x2x1x16xf32, #tpu.memory_space<vmem>>, vector<1x1x1x16xf32>
    %229 = vector.shape_cast %228 : vector<1x1x1x16xf32> to vector<1x16xf32>
    %230 = vector.broadcast %229 : vector<1x16xf32> to vector<16x16xf32>
    %231 = arith.addf %227, %230 : vector<16x16xf32>
    %c1_157 = arith.constant 1 : index
    %c0_158 = arith.constant 0 : index
    %c0_159 = arith.constant 0 : index
    %c0_160 = arith.constant 0 : index
    %232 = vector.load %arg9[%c1_157, %c0_158, %c0_159, %c0_160] : memref<2x2x32x16xbf16, #tpu.memory_space<vmem>>, vector<1x1x32x16xbf16>
    %233 = vector.shape_cast %232 : vector<1x1x32x16xbf16> to vector<32x16xbf16>
    %cst_161 = arith.constant dense<0.000000e+00> : vector<16x16xf32>
    %234 = tpu.matmul %216, %233, %cst_161 {dimension_numbers = #tpu.dot_dimension_numbers<[1], [0], [0], [1], [0, 0, 1, 1], [], []>} : vector<16x32xbf16>, vector<32x16xbf16>, vector<16x16xf32> -> vector<16x16xf32>
    %c1_162 = arith.constant 1 : index
    %c0_163 = arith.constant 0 : index
    %c0_164 = arith.constant 0 : index
    %c0_165 = arith.constant 0 : index
    %235 = vector.load %arg12[%c1_162, %c0_163, %c0_164, %c0_165] : memref<2x2x1x16xf32, #tpu.memory_space<vmem>>, vector<1x1x1x16xf32>
    %236 = vector.shape_cast %235 : vector<1x1x1x16xf32> to vector<1x16xf32>
    %237 = vector.broadcast %236 : vector<1x16xf32> to vector<16x16xf32>
    %238 = arith.addf %234, %237 : vector<16x16xf32>
    %239 = vector.shape_cast %224 : vector<16x16xf32> to vector<2x8x16xf32>
    %240 = arith.truncf %239 : vector<2x8x16xf32> to vector<2x8x16xbf16>
    %241 = vector.shape_cast %231 : vector<16x16xf32> to vector<2x8x16xf32>
    %242 = arith.truncf %241 : vector<2x8x16xf32> to vector<2x8x16xbf16>
    %243 = vector.shape_cast %238 : vector<16x16xf32> to vector<2x8x16xf32>
    %244 = arith.truncf %243 : vector<2x8x16xf32> to vector<2x8x16xbf16>
    "tpu.trace_start"() <{level = 10 : i32, message = "bqd,bkd->bqk"}> : () -> ()
    %cst_166 = arith.constant dense<0.000000e+00> : vector<2x8x8xf32>
    %245 = tpu.matmul %240, %242, %cst_166 {dimension_numbers = #tpu.dot_dimension_numbers<[2], [2], [1], [1], [0, 0, 0, 1, 1, 1], [0], [0]>} : vector<2x8x16xbf16>, vector<2x8x16xbf16>, vector<2x8x8xf32> -> vector<2x8x8xf32>
    "tpu.trace_stop"() : () -> ()
    %cst_167 = arith.constant 2.500000e-01 : f32
    %246 = vector.broadcast %cst_167 : f32 to vector<2x8x8xf32>
    %247 = arith.mulf %245, %246 : vector<2x8x8xf32>
    %248 = vector.broadcast %30 : vector<2x1x8xf32> to vector<2x8x8xf32>
    %249 = arith.addf %247, %248 : vector<2x8x8xf32>
    %cst_168 = arith.constant dense<0xFF800000> : vector<2x8xf32>
    %250 = vector.multi_reduction <maximumf>, %249, %cst_168 [2] : vector<2x8x8xf32> to vector<2x8xf32>
    %251 = vector.shape_cast %250 : vector<2x8xf32> to vector<2x8x1xf32>
    %252 = vector.broadcast %251 : vector<2x8x1xf32> to vector<2x8x8xf32>
    %253 = arith.subf %249, %252 : vector<2x8x8xf32>
    %254 = math.exp %253 : vector<2x8x8xf32>
    %cst_169 = arith.constant dense<0.000000e+00> : vector<2x8xf32>
    %255 = vector.multi_reduction <add>, %254, %cst_169 [2] : vector<2x8x8xf32> to vector<2x8xf32>
    %256 = vector.shape_cast %255 : vector<2x8xf32> to vector<2x8x1xf32>
    %257 = tpu.reciprocal %256 {approx = true} : vector<2x8x1xf32> -> vector<2x8x1xf32>
    %258 = vector.broadcast %257 : vector<2x8x1xf32> to vector<2x8x8xf32>
    %259 = arith.mulf %254, %258 : vector<2x8x8xf32>
    %260 = arith.truncf %259 : vector<2x8x8xf32> to vector<2x8x8xbf16>
    "tpu.trace_start"() <{level = 10 : i32, message = "bqk,bkd->bqd"}> : () -> ()
    %cst_170 = arith.constant dense<0.000000e+00> : vector<2x8x16xf32>
    %261 = tpu.matmul %260, %244, %cst_170 {dimension_numbers = #tpu.dot_dimension_numbers<[2], [1], [1], [2], [0, 0, 0, 1, 1, 2], [0], [0]>} : vector<2x8x8xbf16>, vector<2x8x16xbf16>, vector<2x8x16xf32> -> vector<2x8x16xf32>
    "tpu.trace_stop"() : () -> ()
    %262 = vector.shape_cast %261 : vector<2x8x16xf32> to vector<16x16xf32>
    %263 = arith.truncf %262 : vector<16x16xf32> to vector<16x16xbf16>
    %c1_171 = arith.constant 1 : index
    %c0_172 = arith.constant 0 : index
    %c0_173 = arith.constant 0 : index
    %c0_174 = arith.constant 0 : index
    %264 = vector.load %arg13[%c1_171, %c0_172, %c0_173, %c0_174] : memref<2x2x16x32xbf16, #tpu.memory_space<vmem>>, vector<1x1x16x32xbf16>
    %265 = vector.shape_cast %264 : vector<1x1x16x32xbf16> to vector<16x32xbf16>
    %cst_175 = arith.constant dense<0.000000e+00> : vector<16x32xf32>
    %266 = tpu.matmul %263, %265, %cst_175 {dimension_numbers = #tpu.dot_dimension_numbers<[1], [0], [0], [1], [0, 0, 1, 1], [], []>} : vector<16x16xbf16>, vector<16x32xbf16>, vector<16x32xf32> -> vector<16x32xf32>
    %267 = arith.addf %217, %266 : vector<16x32xf32>
    %c1_176 = arith.constant 1 : index
    %c1_177 = arith.constant 1 : index
    %c0_178 = arith.constant 0 : index
    %c0_179 = arith.constant 0 : index
    %268 = vector.load %arg7[%c1_176, %c1_177, %c0_178, %c0_179] : memref<2x2x32x16xbf16, #tpu.memory_space<vmem>>, vector<1x1x32x16xbf16>
    %269 = vector.shape_cast %268 : vector<1x1x32x16xbf16> to vector<32x16xbf16>
    %cst_180 = arith.constant dense<0.000000e+00> : vector<16x16xf32>
    %270 = tpu.matmul %216, %269, %cst_180 {dimension_numbers = #tpu.dot_dimension_numbers<[1], [0], [0], [1], [0, 0, 1, 1], [], []>} : vector<16x32xbf16>, vector<32x16xbf16>, vector<16x16xf32> -> vector<16x16xf32>
    %c1_181 = arith.constant 1 : index
    %c1_182 = arith.constant 1 : index
    %c0_183 = arith.constant 0 : index
    %c0_184 = arith.constant 0 : index
    %271 = vector.load %arg10[%c1_181, %c1_182, %c0_183, %c0_184] : memref<2x2x1x16xf32, #tpu.memory_space<vmem>>, vector<1x1x1x16xf32>
    %272 = vector.shape_cast %271 : vector<1x1x1x16xf32> to vector<1x16xf32>
    %273 = vector.broadcast %272 : vector<1x16xf32> to vector<16x16xf32>
    %274 = arith.addf %270, %273 : vector<16x16xf32>
    %c1_185 = arith.constant 1 : index
    %c1_186 = arith.constant 1 : index
    %c0_187 = arith.constant 0 : index
    %c0_188 = arith.constant 0 : index
    %275 = vector.load %arg8[%c1_185, %c1_186, %c0_187, %c0_188] : memref<2x2x32x16xbf16, #tpu.memory_space<vmem>>, vector<1x1x32x16xbf16>
    %276 = vector.shape_cast %275 : vector<1x1x32x16xbf16> to vector<32x16xbf16>
    %cst_189 = arith.constant dense<0.000000e+00> : vector<16x16xf32>
    %277 = tpu.matmul %216, %276, %cst_189 {dimension_numbers = #tpu.dot_dimension_numbers<[1], [0], [0], [1], [0, 0, 1, 1], [], []>} : vector<16x32xbf16>, vector<32x16xbf16>, vector<16x16xf32> -> vector<16x16xf32>
    %c1_190 = arith.constant 1 : index
    %c1_191 = arith.constant 1 : index
    %c0_192 = arith.constant 0 : index
    %c0_193 = arith.constant 0 : index
    %278 = vector.load %arg11[%c1_190, %c1_191, %c0_192, %c0_193] : memref<2x2x1x16xf32, #tpu.memory_space<vmem>>, vector<1x1x1x16xf32>
    %279 = vector.shape_cast %278 : vector<1x1x1x16xf32> to vector<1x16xf32>
    %280 = vector.broadcast %279 : vector<1x16xf32> to vector<16x16xf32>
    %281 = arith.addf %277, %280 : vector<16x16xf32>
    %c1_194 = arith.constant 1 : index
    %c1_195 = arith.constant 1 : index
    %c0_196 = arith.constant 0 : index
    %c0_197 = arith.constant 0 : index
    %282 = vector.load %arg9[%c1_194, %c1_195, %c0_196, %c0_197] : memref<2x2x32x16xbf16, #tpu.memory_space<vmem>>, vector<1x1x32x16xbf16>
    %283 = vector.shape_cast %282 : vector<1x1x32x16xbf16> to vector<32x16xbf16>
    %cst_198 = arith.constant dense<0.000000e+00> : vector<16x16xf32>
    %284 = tpu.matmul %216, %283, %cst_198 {dimension_numbers = #tpu.dot_dimension_numbers<[1], [0], [0], [1], [0, 0, 1, 1], [], []>} : vector<16x32xbf16>, vector<32x16xbf16>, vector<16x16xf32> -> vector<16x16xf32>
    %c1_199 = arith.constant 1 : index
    %c1_200 = arith.constant 1 : index
    %c0_201 = arith.constant 0 : index
    %c0_202 = arith.constant 0 : index
    %285 = vector.load %arg12[%c1_199, %c1_200, %c0_201, %c0_202] : memref<2x2x1x16xf32, #tpu.memory_space<vmem>>, vector<1x1x1x16xf32>
    %286 = vector.shape_cast %285 : vector<1x1x1x16xf32> to vector<1x16xf32>
    %287 = vector.broadcast %286 : vector<1x16xf32> to vector<16x16xf32>
    %288 = arith.addf %284, %287 : vector<16x16xf32>
    %289 = vector.shape_cast %274 : vector<16x16xf32> to vector<2x8x16xf32>
    %290 = arith.truncf %289 : vector<2x8x16xf32> to vector<2x8x16xbf16>
    %291 = vector.shape_cast %281 : vector<16x16xf32> to vector<2x8x16xf32>
    %292 = arith.truncf %291 : vector<2x8x16xf32> to vector<2x8x16xbf16>
    %293 = vector.shape_cast %288 : vector<16x16xf32> to vector<2x8x16xf32>
    %294 = arith.truncf %293 : vector<2x8x16xf32> to vector<2x8x16xbf16>
    "tpu.trace_start"() <{level = 10 : i32, message = "bqd,bkd->bqk"}> : () -> ()
    %cst_203 = arith.constant dense<0.000000e+00> : vector<2x8x8xf32>
    %295 = tpu.matmul %290, %292, %cst_203 {dimension_numbers = #tpu.dot_dimension_numbers<[2], [2], [1], [1], [0, 0, 0, 1, 1, 1], [0], [0]>} : vector<2x8x16xbf16>, vector<2x8x16xbf16>, vector<2x8x8xf32> -> vector<2x8x8xf32>
    "tpu.trace_stop"() : () -> ()
    %cst_204 = arith.constant 2.500000e-01 : f32
    %296 = vector.broadcast %cst_204 : f32 to vector<2x8x8xf32>
    %297 = arith.mulf %295, %296 : vector<2x8x8xf32>
    %298 = vector.broadcast %30 : vector<2x1x8xf32> to vector<2x8x8xf32>
    %299 = arith.addf %297, %298 : vector<2x8x8xf32>
    %cst_205 = arith.constant dense<0xFF800000> : vector<2x8xf32>
    %300 = vector.multi_reduction <maximumf>, %299, %cst_205 [2] : vector<2x8x8xf32> to vector<2x8xf32>
    %301 = vector.shape_cast %300 : vector<2x8xf32> to vector<2x8x1xf32>
    %302 = vector.broadcast %301 : vector<2x8x1xf32> to vector<2x8x8xf32>
    %303 = arith.subf %299, %302 : vector<2x8x8xf32>
    %304 = math.exp %303 : vector<2x8x8xf32>
    %cst_206 = arith.constant dense<0.000000e+00> : vector<2x8xf32>
    %305 = vector.multi_reduction <add>, %304, %cst_206 [2] : vector<2x8x8xf32> to vector<2x8xf32>
    %306 = vector.shape_cast %305 : vector<2x8xf32> to vector<2x8x1xf32>
    %307 = tpu.reciprocal %306 {approx = true} : vector<2x8x1xf32> -> vector<2x8x1xf32>
    %308 = vector.broadcast %307 : vector<2x8x1xf32> to vector<2x8x8xf32>
    %309 = arith.mulf %304, %308 : vector<2x8x8xf32>
    %310 = arith.truncf %309 : vector<2x8x8xf32> to vector<2x8x8xbf16>
    "tpu.trace_start"() <{level = 10 : i32, message = "bqk,bkd->bqd"}> : () -> ()
    %cst_207 = arith.constant dense<0.000000e+00> : vector<2x8x16xf32>
    %311 = tpu.matmul %310, %294, %cst_207 {dimension_numbers = #tpu.dot_dimension_numbers<[2], [1], [1], [2], [0, 0, 0, 1, 1, 2], [0], [0]>} : vector<2x8x8xbf16>, vector<2x8x16xbf16>, vector<2x8x16xf32> -> vector<2x8x16xf32>
    "tpu.trace_stop"() : () -> ()
    %312 = vector.shape_cast %311 : vector<2x8x16xf32> to vector<16x16xf32>
    %313 = arith.truncf %312 : vector<16x16xf32> to vector<16x16xbf16>
    %c1_208 = arith.constant 1 : index
    %c1_209 = arith.constant 1 : index
    %c0_210 = arith.constant 0 : index
    %c0_211 = arith.constant 0 : index
    %314 = vector.load %arg13[%c1_208, %c1_209, %c0_210, %c0_211] : memref<2x2x16x32xbf16, #tpu.memory_space<vmem>>, vector<1x1x16x32xbf16>
    %315 = vector.shape_cast %314 : vector<1x1x16x32xbf16> to vector<16x32xbf16>
    %cst_212 = arith.constant dense<0.000000e+00> : vector<16x32xf32>
    %316 = tpu.matmul %313, %315, %cst_212 {dimension_numbers = #tpu.dot_dimension_numbers<[1], [0], [0], [1], [0, 0, 1, 1], [], []>} : vector<16x16xbf16>, vector<16x32xbf16>, vector<16x32xf32> -> vector<16x32xf32>
    %317 = arith.addf %267, %316 : vector<16x32xf32>
    %c1_213 = arith.constant 1 : index
    %c0_214 = arith.constant 0 : index
    %c0_215 = arith.constant 0 : index
    %318 = vector.load %arg14[%c1_213, %c0_214, %c0_215] : memref<2x1x32xf32, #tpu.memory_space<vmem>>, vector<1x1x32xf32>
    %319 = vector.shape_cast %318 : vector<1x1x32xf32> to vector<1x32xf32>
    %320 = vector.broadcast %319 : vector<1x32xf32> to vector<16x32xf32>
    %321 = arith.addf %317, %320 : vector<16x32xf32>
    %322 = arith.addf %215, %321 : vector<16x32xf32>
    %c1_216 = arith.constant 1 : index
    %c0_217 = arith.constant 0 : index
    %c0_218 = arith.constant 0 : index
    %323 = vector.load %arg15[%c1_216, %c0_217, %c0_218] : memref<2x1x32xf32, #tpu.memory_space<vmem>>, vector<1x1x32xf32>
    %324 = vector.shape_cast %323 : vector<1x1x32xf32> to vector<1x32xf32>
    %c1_219 = arith.constant 1 : index
    %c0_220 = arith.constant 0 : index
    %c0_221 = arith.constant 0 : index
    %325 = vector.load %arg16[%c1_219, %c0_220, %c0_221] : memref<2x1x32xf32, #tpu.memory_space<vmem>>, vector<1x1x32xf32>
    %326 = vector.shape_cast %325 : vector<1x1x32xf32> to vector<1x32xf32>
    %cst_222 = arith.constant dense<0.000000e+00> : vector<16xf32>
    %327 = vector.multi_reduction <add>, %322, %cst_222 [1] : vector<16x32xf32> to vector<16xf32>
    %328 = vector.shape_cast %327 : vector<16xf32> to vector<16x1xf32>
    %cst_223 = arith.constant 3.200000e+01 : f32
    %329 = vector.broadcast %cst_223 : f32 to vector<16x1xf32>
    %330 = arith.divf %328, %329 : vector<16x1xf32>
    %331 = vector.broadcast %330 : vector<16x1xf32> to vector<16x32xf32>
    %332 = arith.subf %322, %331 : vector<16x32xf32>
    %333 = arith.mulf %332, %332 : vector<16x32xf32>
    %cst_224 = arith.constant dense<0.000000e+00> : vector<16xf32>
    %334 = vector.multi_reduction <add>, %333, %cst_224 [1] : vector<16x32xf32> to vector<16xf32>
    %335 = vector.shape_cast %334 : vector<16xf32> to vector<16x1xf32>
    %cst_225 = arith.constant 3.200000e+01 : f32
    %336 = vector.broadcast %cst_225 : f32 to vector<16x1xf32>
    %337 = arith.divf %335, %336 : vector<16x1xf32>
    %cst_226 = arith.constant 9.99999996E-13 : f32
    %338 = vector.broadcast %cst_226 : f32 to vector<16x1xf32>
    %339 = arith.addf %337, %338 : vector<16x1xf32>
    %340 = math.rsqrt %339 : vector<16x1xf32>
    %341 = vector.broadcast %340 : vector<16x1xf32> to vector<16x32xf32>
    %342 = arith.mulf %332, %341 : vector<16x32xf32>
    %343 = vector.broadcast %324 : vector<1x32xf32> to vector<16x32xf32>
    %344 = arith.mulf %342, %343 : vector<16x32xf32>
    %345 = vector.broadcast %326 : vector<1x32xf32> to vector<16x32xf32>
    %346 = arith.addf %344, %345 : vector<16x32xf32>
    %347 = arith.truncf %346 : vector<16x32xf32> to vector<16x32xbf16>
    %c1_227 = arith.constant 1 : index
    %c0_228 = arith.constant 0 : index
    %c0_229 = arith.constant 0 : index
    %348 = vector.load %arg17[%c1_227, %c0_228, %c0_229] : memref<2x32x64xbf16, #tpu.memory_space<vmem>>, vector<1x32x64xbf16>
    %349 = vector.shape_cast %348 : vector<1x32x64xbf16> to vector<32x64xbf16>
    %cst_230 = arith.constant dense<0.000000e+00> : vector<16x64xf32>
    %350 = tpu.matmul %347, %349, %cst_230 {dimension_numbers = #tpu.dot_dimension_numbers<[1], [0], [0], [1], [0, 0, 1, 1], [], []>} : vector<16x32xbf16>, vector<32x64xbf16>, vector<16x64xf32> -> vector<16x64xf32>
    %c1_231 = arith.constant 1 : index
    %c0_232 = arith.constant 0 : index
    %c0_233 = arith.constant 0 : index
    %351 = vector.load %arg18[%c1_231, %c0_232, %c0_233] : memref<2x1x64xf32, #tpu.memory_space<vmem>>, vector<1x1x64xf32>
    %352 = vector.shape_cast %351 : vector<1x1x64xf32> to vector<1x64xf32>
    %353 = vector.broadcast %352 : vector<1x64xf32> to vector<16x64xf32>
    %354 = arith.addf %350, %353 : vector<16x64xf32>
    %cst_234 = arith.constant 5.000000e-01 : f32
    %355 = vector.broadcast %cst_234 : f32 to vector<16x64xf32>
    %356 = arith.mulf %355, %354 : vector<16x64xf32>
    %cst_235 = arith.constant 4.471500e-02 : f32
    %357 = vector.broadcast %cst_235 : f32 to vector<16x64xf32>
    %358 = arith.mulf %357, %354 : vector<16x64xf32>
    %359 = arith.mulf %358, %354 : vector<16x64xf32>
    %360 = arith.mulf %359, %354 : vector<16x64xf32>
    %361 = arith.addf %354, %360 : vector<16x64xf32>
    %cst_236 = arith.constant 0.797884583 : f32
    %362 = vector.broadcast %cst_236 : f32 to vector<16x64xf32>
    %363 = arith.mulf %362, %361 : vector<16x64xf32>
    %364 = math.tanh %363 : vector<16x64xf32>
    %cst_237 = arith.constant 1.000000e+00 : f32
    %365 = vector.broadcast %cst_237 : f32 to vector<16x64xf32>
    %366 = arith.addf %365, %364 : vector<16x64xf32>
    %367 = arith.mulf %356, %366 : vector<16x64xf32>
    %368 = arith.truncf %367 : vector<16x64xf32> to vector<16x64xbf16>
    %c1_238 = arith.constant 1 : index
    %c0_239 = arith.constant 0 : index
    %c0_240 = arith.constant 0 : index
    %369 = vector.load %arg19[%c1_238, %c0_239, %c0_240] : memref<2x64x32xbf16, #tpu.memory_space<vmem>>, vector<1x64x32xbf16>
    %370 = vector.shape_cast %369 : vector<1x64x32xbf16> to vector<64x32xbf16>
    %cst_241 = arith.constant dense<0.000000e+00> : vector<16x32xf32>
    %371 = tpu.matmul %368, %370, %cst_241 {dimension_numbers = #tpu.dot_dimension_numbers<[1], [0], [0], [1], [0, 0, 1, 1], [], []>} : vector<16x64xbf16>, vector<64x32xbf16>, vector<16x32xf32> -> vector<16x32xf32>
    %c1_242 = arith.constant 1 : index
    %c0_243 = arith.constant 0 : index
    %c0_244 = arith.constant 0 : index
    %372 = vector.load %arg20[%c1_242, %c0_243, %c0_244] : memref<2x1x32xf32, #tpu.memory_space<vmem>>, vector<1x1x32xf32>
    %373 = vector.shape_cast %372 : vector<1x1x32xf32> to vector<1x32xf32>
    %374 = vector.broadcast %373 : vector<1x32xf32> to vector<16x32xf32>
    %375 = arith.addf %371, %374 : vector<16x32xf32>
    %376 = arith.addf %346, %375 : vector<16x32xf32>
    %c1_245 = arith.constant 1 : index
    %c0_246 = arith.constant 0 : index
    %c0_247 = arith.constant 0 : index
    %377 = vector.load %arg21[%c1_245, %c0_246, %c0_247] : memref<2x1x32xf32, #tpu.memory_space<vmem>>, vector<1x1x32xf32>
    %378 = vector.shape_cast %377 : vector<1x1x32xf32> to vector<1x32xf32>
    %c1_248 = arith.constant 1 : index
    %c0_249 = arith.constant 0 : index
    %c0_250 = arith.constant 0 : index
    %379 = vector.load %arg22[%c1_248, %c0_249, %c0_250] : memref<2x1x32xf32, #tpu.memory_space<vmem>>, vector<1x1x32xf32>
    %380 = vector.shape_cast %379 : vector<1x1x32xf32> to vector<1x32xf32>
    %cst_251 = arith.constant dense<0.000000e+00> : vector<16xf32>
    %381 = vector.multi_reduction <add>, %376, %cst_251 [1] : vector<16x32xf32> to vector<16xf32>
    %382 = vector.shape_cast %381 : vector<16xf32> to vector<16x1xf32>
    %cst_252 = arith.constant 3.200000e+01 : f32
    %383 = vector.broadcast %cst_252 : f32 to vector<16x1xf32>
    %384 = arith.divf %382, %383 : vector<16x1xf32>
    %385 = vector.broadcast %384 : vector<16x1xf32> to vector<16x32xf32>
    %386 = arith.subf %376, %385 : vector<16x32xf32>
    %387 = arith.mulf %386, %386 : vector<16x32xf32>
    %cst_253 = arith.constant dense<0.000000e+00> : vector<16xf32>
    %388 = vector.multi_reduction <add>, %387, %cst_253 [1] : vector<16x32xf32> to vector<16xf32>
    %389 = vector.shape_cast %388 : vector<16xf32> to vector<16x1xf32>
    %cst_254 = arith.constant 3.200000e+01 : f32
    %390 = vector.broadcast %cst_254 : f32 to vector<16x1xf32>
    %391 = arith.divf %389, %390 : vector<16x1xf32>
    %cst_255 = arith.constant 9.99999996E-13 : f32
    %392 = vector.broadcast %cst_255 : f32 to vector<16x1xf32>
    %393 = arith.addf %391, %392 : vector<16x1xf32>
    %394 = math.rsqrt %393 : vector<16x1xf32>
    %395 = vector.broadcast %394 : vector<16x1xf32> to vector<16x32xf32>
    %396 = arith.mulf %386, %395 : vector<16x32xf32>
    %397 = vector.broadcast %378 : vector<1x32xf32> to vector<16x32xf32>
    %398 = arith.mulf %396, %397 : vector<16x32xf32>
    %399 = vector.broadcast %380 : vector<1x32xf32> to vector<16x32xf32>
    %400 = arith.addf %398, %399 : vector<16x32xf32>
    %401 = vector.shape_cast %400 : vector<16x32xf32> to vector<2x8x32xf32>
    %402 = vector.extract_strided_slice %401 {offsets = [0, 0, 0], sizes = [2, 1, 32], strides = [1, 1, 1]} : vector<2x8x32xf32> to vector<2x1x32xf32>
    %403 = vector.shape_cast %402 : vector<2x1x32xf32> to vector<2x32xf32>
    %404 = arith.truncf %403 : vector<2x32xf32> to vector<2x32xbf16>
    %c0_256 = arith.constant 0 : index
    %c0_257 = arith.constant 0 : index
    %405 = vector.load %arg23[%c0_256, %c0_257] : memref<32x32xbf16, #tpu.memory_space<vmem>>, vector<32x32xbf16>
    %cst_258 = arith.constant dense<0.000000e+00> : vector<2x32xf32>
    %406 = tpu.matmul %404, %405, %cst_258 {dimension_numbers = #tpu.dot_dimension_numbers<[1], [0], [0], [1], [0, 0, 1, 1], [], []>} : vector<2x32xbf16>, vector<32x32xbf16>, vector<2x32xf32> -> vector<2x32xf32>
    %c0_259 = arith.constant 0 : index
    %c0_260 = arith.constant 0 : index
    %407 = vector.load %arg24[%c0_259, %c0_260] : memref<1x32xf32, #tpu.memory_space<vmem>>, vector<1x32xf32>
    %408 = vector.broadcast %407 : vector<1x32xf32> to vector<2x32xf32>
    %409 = arith.addf %406, %408 : vector<2x32xf32>
    %410 = math.tanh %409 : vector<2x32xf32>
    %411 = arith.truncf %410 : vector<2x32xf32> to vector<2x32xbf16>
    %c0_261 = arith.constant 0 : index
    %c0_262 = arith.constant 0 : index
    %412 = vector.load %arg25[%c0_261, %c0_262] : memref<32x3xbf16, #tpu.memory_space<vmem>>, vector<32x3xbf16>
    %cst_263 = arith.constant dense<0.000000e+00> : vector<2x3xf32>
    %413 = tpu.matmul %411, %412, %cst_263 {dimension_numbers = #tpu.dot_dimension_numbers<[1], [0], [0], [1], [0, 0, 1, 1], [], []>} : vector<2x32xbf16>, vector<32x3xbf16>, vector<2x3xf32> -> vector<2x3xf32>
    %c0_264 = arith.constant 0 : index
    %c0_265 = arith.constant 0 : index
    %414 = vector.load %arg26[%c0_264, %c0_265] : memref<1x3xf32, #tpu.memory_space<vmem>>, vector<1x3xf32>
    %415 = vector.broadcast %414 : vector<1x3xf32> to vector<2x3xf32>
    %416 = arith.addf %413, %415 : vector<2x3xf32>
    %c0_266 = arith.constant 0 : index
    %c0_267 = arith.constant 0 : index
    %417 = vector.load %arg27[%c0_266, %c0_267] : memref<2x3xf32, #tpu.memory_space<vmem>>, vector<2x3xf32>
    tpu.vector_store %arg27[%c0_266, %c0_267], %416 {strides = array<i32>} : memref<2x3xf32, #tpu.memory_space<vmem>>, vector<2x3xf32>,
    return
  }
  func.func @transform_0(%arg0: i32) -> (i32, i32, i32) {
    %c0_i32 = arith.constant 0 : i32
    %c0_i32_0 = arith.constant 0 : i32
    %c0_i32_1 = arith.constant 0 : i32
    %c0_i32_2 = arith.constant 0 : i32
    return %c0_i32, %c0_i32_0, %c0_i32_1 : i32, i32, i32
  }
  func.func @transform_1(%arg0: i32) -> (i32, i32, i32) {
    %c0_i32 = arith.constant 0 : i32
    %c0_i32_0 = arith.constant 0 : i32
    %c0_i32_1 = arith.constant 0 : i32
    %c0_i32_2 = arith.constant 0 : i32
    return %c0_i32, %c0_i32_0, %c0_i32_1 : i32, i32, i32
  }
  func.func @transform_2(%arg0: i32) -> (i32, i32, i32) {
    %c0_i32 = arith.constant 0 : i32
    %c0_i32_0 = arith.constant 0 : i32
    %c0_i32_1 = arith.constant 0 : i32
    %c0_i32_2 = arith.constant 0 : i32
    return %c0_i32, %c0_i32_0, %c0_i32_1 : i32, i32, i32
  }
  func.func @transform_3(%arg0: i32) -> (i32, i32, i32) {
    %c0_i32 = arith.constant 0 : i32
    %c0_i32_0 = arith.constant 0 : i32
    %c0_i32_1 = arith.constant 0 : i32
    %c0_i32_2 = arith.constant 0 : i32
    return %c0_i32, %c0_i32_0, %c0_i32_1 : i32, i32, i32
  }
  func.func @transform_4(%arg0: i32) -> (i32, i32, i32) {
    %c0_i32 = arith.constant 0 : i32
    %c0_i32_0 = arith.constant 0 : i32
    %c0_i32_1 = arith.constant 0 : i32
    %c0_i32_2 = arith.constant 0 : i32
    return %c0_i32, %c0_i32_0, %c0_i32_1 : i32, i32, i32
  }
  func.func @transform_5(%arg0: i32) -> (i32, i32, i32) {
    %c0_i32 = arith.constant 0 : i32
    %c0_i32_0 = arith.constant 0 : i32
    %c0_i32_1 = arith.constant 0 : i32
    %c0_i32_2 = arith.constant 0 : i32
    return %c0_i32, %c0_i32_0, %c0_i32_1 : i32, i32, i32
  }
  func.func @transform_6(%arg0: i32) -> (i32, i32, i32, i32) {
    %c0_i32 = arith.constant 0 : i32
    %c0_i32_0 = arith.constant 0 : i32
    %c0_i32_1 = arith.constant 0 : i32
    %c0_i32_2 = arith.constant 0 : i32
    %c0_i32_3 = arith.constant 0 : i32
    return %c0_i32, %c0_i32_0, %c0_i32_1, %c0_i32_2 : i32, i32, i32, i32
  }
  func.func @transform_7(%arg0: i32) -> (i32, i32, i32, i32) {
    %c0_i32 = arith.constant 0 : i32
    %c0_i32_0 = arith.constant 0 : i32
    %c0_i32_1 = arith.constant 0 : i32
    %c0_i32_2 = arith.constant 0 : i32
    %c0_i32_3 = arith.constant 0 : i32
    return %c0_i32, %c0_i32_0, %c0_i32_1, %c0_i32_2 : i32, i32, i32, i32
  }
  func.func @transform_8(%arg0: i32) -> (i32, i32, i32, i32) {
    %c0_i32 = arith.constant 0 : i32
    %c0_i32_0 = arith.constant 0 : i32
    %c0_i32_1 = arith.constant 0 : i32
    %c0_i32_2 = arith.constant 0 : i32
    %c0_i32_3 = arith.constant 0 : i32
    return %c0_i32, %c0_i32_0, %c0_i32_1, %c0_i32_2 : i32, i32, i32, i32
  }
  func.func @transform_9(%arg0: i32) -> (i32, i32, i32, i32) {
    %c0_i32 = arith.constant 0 : i32
    %c0_i32_0 = arith.constant 0 : i32
    %c0_i32_1 = arith.constant 0 : i32
    %c0_i32_2 = arith.constant 0 : i32
    %c0_i32_3 = arith.constant 0 : i32
    return %c0_i32, %c0_i32_0, %c0_i32_1, %c0_i32_2 : i32, i32, i32, i32
  }
  func.func @transform_10(%arg0: i32) -> (i32, i32, i32, i32) {
    %c0_i32 = arith.constant 0 : i32
    %c0_i32_0 = arith.constant 0 : i32
    %c0_i32_1 = arith.constant 0 : i32
    %c0_i32_2 = arith.constant 0 : i32
    %c0_i32_3 = arith.constant 0 : i32
    return %c0_i32, %c0_i32_0, %c0_i32_1, %c0_i32_2 : i32, i32, i32, i32
  }
  func.func @transform_11(%arg0: i32) -> (i32, i32, i32, i32) {
    %c0_i32 = arith.constant 0 : i32
    %c0_i32_0 = arith.constant 0 : i32
    %c0_i32_1 = arith.constant 0 : i32
    %c0_i32_2 = arith.constant 0 : i32
    %c0_i32_3 = arith.constant 0 : i32
    return %c0_i32, %c0_i32_0, %c0_i32_1, %c0_i32_2 : i32, i32, i32, i32
  }
  func.func @transform_12(%arg0: i32) -> (i32, i32, i32, i32) {
    %c0_i32 = arith.constant 0 : i32
    %c0_i32_0 = arith.constant 0 : i32
    %c0_i32_1 = arith.constant 0 : i32
    %c0_i32_2 = arith.constant 0 : i32
    %c0_i32_3 = arith.constant 0 : i32
    return %c0_i32, %c0_i32_0, %c0_i32_1, %c0_i32_2 : i32, i32, i32, i32
  }
  func.func @transform_13(%arg0: i32) -> (i32, i32, i32) {
    %c0_i32 = arith.constant 0 : i32
    %c0_i32_0 = arith.constant 0 : i32
    %c0_i32_1 = arith.constant 0 : i32
    %c0_i32_2 = arith.constant 0 : i32
    return %c0_i32, %c0_i32_0, %c0_i32_1 : i32, i32, i32
  }
  func.func @transform_14(%arg0: i32) -> (i32, i32, i32) {
    %c0_i32 = arith.constant 0 : i32
    %c0_i32_0 = arith.constant 0 : i32
    %c0_i32_1 = arith.constant 0 : i32
    %c0_i32_2 = arith.constant 0 : i32
    return %c0_i32, %c0_i32_0, %c0_i32_1 : i32, i32, i32
  }
  func.func @transform_15(%arg0: i32) -> (i32, i32, i32) {
    %c0_i32 = arith.constant 0 : i32
    %c0_i32_0 = arith.constant 0 : i32
    %c0_i32_1 = arith.constant 0 : i32
    %c0_i32_2 = arith.constant 0 : i32
    return %c0_i32, %c0_i32_0, %c0_i32_1 : i32, i32, i32
  }
  func.func @transform_16(%arg0: i32) -> (i32, i32, i32) {
    %c0_i32 = arith.constant 0 : i32
    %c0_i32_0 = arith.constant 0 : i32
    %c0_i32_1 = arith.constant 0 : i32
    %c0_i32_2 = arith.constant 0 : i32
    return %c0_i32, %c0_i32_0, %c0_i32_1 : i32, i32, i32
  }
  func.func @transform_17(%arg0: i32) -> (i32, i32, i32) {
    %c0_i32 = arith.constant 0 : i32
    %c0_i32_0 = arith.constant 0 : i32
    %c0_i32_1 = arith.constant 0 : i32
    %c0_i32_2 = arith.constant 0 : i32
    return %c0_i32, %c0_i32_0, %c0_i32_1 : i32, i32, i32
  }
  func.func @transform_18(%arg0: i32) -> (i32, i32, i32) {
    %c0_i32 = arith.constant 0 : i32
    %c0_i32_0 = arith.constant 0 : i32
    %c0_i32_1 = arith.constant 0 : i32
    %c0_i32_2 = arith.constant 0 : i32
    return %c0_i32, %c0_i32_0, %c0_i32_1 : i32, i32, i32
  }
  func.func @transform_19(%arg0: i32) -> (i32, i32, i32) {
    %c0_i32 = arith.constant 0 : i32
    %c0_i32_0 = arith.constant 0 : i32
    %c0_i32_1 = arith.constant 0 : i32
    %c0_i32_2 = arith.constant 0 : i32
    return %c0_i32, %c0_i32_0, %c0_i32_1 : i32, i32, i32
  }
  func.func @transform_20(%arg0: i32) -> (i32, i32, i32) {
    %c0_i32 = arith.constant 0 : i32
    %c0_i32_0 = arith.constant 0 : i32
    %c0_i32_1 = arith.constant 0 : i32
    %c0_i32_2 = arith.constant 0 : i32
    return %c0_i32, %c0_i32_0, %c0_i32_1 : i32, i32, i32
  }
  func.func @transform_21(%arg0: i32) -> (i32, i32, i32) {
    %c0_i32 = arith.constant 0 : i32
    %c0_i32_0 = arith.constant 0 : i32
    %c0_i32_1 = arith.constant 0 : i32
    %c0_i32_2 = arith.constant 0 : i32
    return %c0_i32, %c0_i32_0, %c0_i32_1 : i32, i32, i32
  }
  func.func @transform_22(%arg0: i32) -> (i32, i32) {
    %c0_i32 = arith.constant 0 : i32
    %c0_i32_0 = arith.constant 0 : i32
    %c0_i32_1 = arith.constant 0 : i32
    return %c0_i32, %c0_i32_0 : i32, i32
  }
  func.func @transform_23(%arg0: i32) -> (i32, i32) {
    %c0_i32 = arith.constant 0 : i32
    %c0_i32_0 = arith.constant 0 : i32
    %c0_i32_1 = arith.constant 0 : i32
    return %c0_i32, %c0_i32_0 : i32, i32
  }
  func.func @transform_24(%arg0: i32) -> (i32, i32) {
    %c0_i32 = arith.constant 0 : i32
    %c0_i32_0 = arith.constant 0 : i32
    %c0_i32_1 = arith.constant 0 : i32
    return %c0_i32, %c0_i32_0 : i32, i32
  }
  func.func @transform_25(%arg0: i32) -> (i32, i32) {
    %c0_i32 = arith.constant 0 : i32
    %c0_i32_0 = arith.constant 0 : i32
    %c0_i32_1 = arith.constant 0 : i32
    return %c0_i32, %c0_i32_0 : i32, i32
  }
  func.func @transform_26(%arg0: i32) -> (i32, i32) {
    %c0_i32 = arith.constant 0 : i32
    %c0_i32_0 = arith.constant 0 : i32
    %c0_i32_1 = arith.constant 0 : i32
    return %c0_i32, %c0_i32_0 : i32, i32
  }
}

</mosaic_0001>

<bundles_post_ra>
// kernel: bert_forward.1
= control target key start
LH: loop header
LB: loop body
LE: loop exit
PB: predicated region body
PF: predicated region fallthrough
CT: control target
= control target key end

     0   :  { %s4127_s0 = inlined_call_operand.vmem [shape: f32[2,8,32], index: 0, kind: input, shape index: {}]   ;;  %s4128_s1 = inlined_call_operand.vmem [shape: f32[1,8,32], index: 1, kind: input, shape index: {}]   ;;  %s4129_s2 = inlined_call_operand.vmem [shape: f32[1,1,32], index: 2, kind: input, shape index: {}]   ;;  %s4130_s3 = inlined_call_operand.vmem [shape: f32[1,1,32], index: 3, kind: input, shape index: {}]   ;;  %s4131_s4 = inlined_call_operand.vmem [shape: f32[1,1,32], index: 4, kind: input, shape index: {}]   ;;  %s4132_s5 = inlined_call_operand.vmem [shape: f32[2,1,8], index: 5, kind: input, shape index: {}]   ;;  %s4133_s6 = inlined_call_operand.vmem [shape: bf16[2,2,32,16], index: 6, kind: input, shape index: {}]   ;;  %s4134_s7 = inlined_call_operand.vmem [shape: bf16[2,2,32,16], index: 7, kind: input, shape index: {}]   ;;  %s4135_s8 = inlined_call_operand.vmem [shape: bf16[2,2,32,16], index: 8, kind: input, shape index: {}]   ;;  %s4136_s9 = inlined_call_operand.vmem [shape: f32[2,2,1,16], index: 9, kind: input, shape index: {}]   ;;  %s4137_s10 = inlined_call_operand.vmem [shape: f32[2,2,1,16], index: 10, kind: input, shape index: {}]   ;;  %s4138_s11 = inlined_call_operand.vmem [shape: f32[2,2,1,16], index: 11, kind: input, shape index: {}]   ;;  %s4139_s12 = inlined_call_operand.vmem [shape: bf16[2,2,16,32], index: 12, kind: input, shape index: {}]   ;;  %s4140_s13 = inlined_call_operand.vmem [shape: f32[2,1,32], index: 13, kind: input, shape index: {}]   ;;  %s4141_s14 = inlined_call_operand.vmem [shape: f32[2,1,32], index: 14, kind: input, shape index: {}]   ;;  %s4142_s15 = inlined_call_operand.vmem [shape: f32[2,1,32], index: 15, kind: input, shape index: {}]   ;;  %s4143_s16 = inlined_call_operand.vmem [shape: bf16[2,32,64], index: 16, kind: input, shape index: {}]   ;;  %s4144_s17 = inlined_call_operand.vmem [shape: f32[2,1,64], index: 17, kind: input, shape index: {}]   ;;  %s4145_s18 = inlined_call_operand.vmem [shape: bf16[2,64,32], index: 18, kind: input, shape index: {}]   ;;  %s4146_s19 = inlined_call_operand.vmem [shape: f32[2,1,32], index: 19, kind: input, shape index: {}]   ;;  %s4147_s20 = inlined_call_operand.vmem [shape: f32[2,1,32], index: 20, kind: input, shape index: {}]   ;;  %s4148_s21 = inlined_call_operand.vmem [shape: f32[2,1,32], index: 21, kind: input, shape index: {}]   ;;  %s4149_s22 = inlined_call_operand.vmem [shape: bf16[32,32], index: 22, kind: input, shape index: {}]   ;;  %s4150_s23 = inlined_call_operand.vmem [shape: f32[1,32], index: 23, kind: input, shape index: {}]   ;;  %s4151_s24 = inlined_call_operand.vmem [shape: bf16[32,3], index: 24, kind: input, shape index: {}]   ;;  %s4152_s25 = inlined_call_operand.vmem [shape: f32[1,3], index: 25, kind: input, shape index: {}]   ;;  %s4153_s26 = inlined_call_operand.hbm [shape: f32[2,3], index: 26, kind: output, shape index: {}]  }
   0x1   :  { %4162 = sst [smem:[#allocation5_spill]] %s4127_s0 }
   0x2   :  { %4163 = sst [smem:[#allocation6_spill]] %s4128_s1 }
   0x3   :  { %4164 = sst [smem:[#allocation7_spill]] %s4129_s2 }
   0x4   :  { %4165 = sst [smem:[#allocation8_spill]] %s4130_s3 }
   0x5   :  { %4166 = sst [smem:[#allocation9_spill]] %s4131_s4 }
   0x6   :  { %4167 = sst [smem:[#allocation10_spill]] %s4132_s5 }
   0x7   :  { %4168 = sst [smem:[#allocation11_spill]] %s4133_s6 }
   0x8   :  { %4169 = sst [smem:[#allocation12_spill]] %s4134_s7 }
   0x9   :  { %4170 = sst [smem:[#allocation13_spill]] %s4135_s8 }
   0xa   :  { %4171 = sst [smem:[#allocation14_spill]] %s4136_s9 }
   0xb   :  { %4172 = sst [smem:[#allocation15_spill]] %s4137_s10 }
   0xc   :  { %4173 = sst [smem:[#allocation16_spill]] %s4148_s21 }
   0xd   :  { %s4174_s7 = sld [smem:[#allocation5_spill]]  ;;  %s4175_s21 = sld [smem:[#allocation6_spill]]  ;;  %vm101_vm0 = vcmask 261120  }
   0xe   :  { %s4176_s0 = sld [smem:[#allocation7_spill]] }
  0x13   :  { %v85_v0 = vld [vmem:[%s4174_s7] sm:$0xff]  ;;  %v86_v4 = vld [vmem:[%s4174_s7 + $0x8] sm:$0xff] }
  0x14   :  { %v87_v1 = vld [vmem:[%s4175_s21] sm:$0xff] }
  0x15   :  { %v2755_v2 = vld [vmem:[%s4176_s0] ss:$0 sm:$0xff]  ;;  %v88_v3 = vadd.f32 %v87_v1, %v85_v0  ;;  %v89_v5 = vadd.f32 %v87_v1, %v86_v4 }
  0x17   :  { %v97_v6 = vadd.f32 %v2755_v2, %v88_v3  ;;  %v98_v7 = vadd.f32 %v2755_v2, %v89_v5 }
  0x19   :  { %v102_v8 = vsel %vm101_vm0, %v97_v6, 0.0  ;;  %v105_v9 = vsel %vm101_vm0, %v98_v7, 0.0 }
  0x1a   :  { %103 = vadd.xlane.f32.xlu0 %v102_v8 }
  0x1e   :  { %106 = vadd.xlane.f32.xlu0 %v105_v9 }
  0x1f   :  { %31 = vsyncpa [#allocation3], 0  ;;  %s4177_s5 = sld [smem:[#allocation11_spill]]  ;;  %s4178_s1 = sld [smem:[#allocation12_spill]]  ;;  %v3445_v22 = vmov 0.0   ;;  %vm3446_vm1 = vmmov 0  }
  0x20   :  { %3038 = vmatprep.subr.bf16.mxu0 %v3445_v22  ;;  %3046 = vmatprep.subr.bf16.mxu1 %v3445_v22  ;;  %s4179_s29 = sld [smem:[#allocation8_spill]]  ;;  %s4180_s30 = sld [smem:[#allocation9_spill]]  ;;  %vm349_vm2 = vcmask 130048   ;;  %v2766_v59 = vld [vmem:[%s4138_s11] ss:$0 sm:$0xff]  ;;  %vm486_vm3 = vcmask 1043456  }
  0x21   :  { %3042 = vmatprep.mubr.msk.bf16.mxu0 %vm3446_vm1, %v3445_v22  ;;  %3050 = vmatprep.mubr.msk.bf16.mxu1 %vm3446_vm1, %v3445_v22  ;;  %s4181_s10 = sld [smem:[#allocation13_spill]]  ;;  %s4182_s28 = sld [smem:[#allocation15_spill]]  ;;  %vm458_vm4 = vcmask 64512   ;;  %vm1280_vm5 = vcmask 523264   ;;  %vm2613_vm6 = vcmask 1041409   ;;  %vm2739_vm7 = vcmask 17408  }
  0x22   :  { %s4184_s2 = sld [smem:[#allocation10_spill]] }
  0x25   :  { %v3313_v20 = vld [vmem:[%s4177_s5] sm:$0xff]   ;;  %v3315_v23 = vld [vmem:[%s4177_s5 + $0x8] sm:$0xff]  }
  0x26   :  { %v3314_v21 = vld [vmem:[%s4178_s1] sm:$0xff]   ;;  %3039 = vmatpush3.bf16.msra.mxu0 %v3313_v20  ;;  %v3316_v24 = vld [vmem:[%s4178_s1 + $0x8] sm:$0xff]  }
  0x27   :  { %3047 = vmatpush3.bf16.msra.mxu1 %v3314_v21  ;;  %3040 = vmatprep.subr.bf16.mxu0 %v3445_v22  ;;  %v2756_v33 = vld [vmem:[%s4179_s29] ss:$0 sm:$0xff]  ;;  %v3318_v43 = vld [vmem:[%s4181_s10 + $0x8] sm:$0xff]   ;;  %s4183_s29 = sld [smem:[#allocation14_spill]] }
  0x28   :  { %3048 = vmatprep.subr.bf16.mxu1 %v3445_v22  ;;  %v2757_v37 = vld [vmem:[%s4180_s30] ss:$0 sm:$0xff]  ;;  %s4185_s30 = sld [smem:[#allocation16_spill]] }
  0x29   :  { %v3317_v41 = vld [vmem:[%s4181_s10] sm:$0xff]  }
  0x2a   :  { %3041 = vmatpush3.bf16.msra.mxu0 %v3315_v23  ;;  %v2762_v44 = vld [vmem:[%s4182_s28] ss:$0 sm:$0xff] }
  0x2b   :  { %3049 = vmatpush3.bf16.msra.mxu1 %v3316_v24  ;;  %3054 = vmatprep.subr.bf16.mxu0 %v3445_v22 }
  0x2c   :  { %3062 = vmatprep.subr.bf16.mxu1 %v3445_v22 }
  0x2d   :  { %v2758_v56 = vld [vmem:[%s4183_s29] ss:$0 sm:$0xff] }
  0xa7   :  { %v104_v10 = vpop.xlane.xlu0 %103 }
  0xa8   :  { %v109_v11 = vmul.f32 0.03125, %v104_v10 }
  0xaa   :  { %v111_v12 = vsub.f32 %v97_v6, %v109_v11 }
  0xab   :  { %v107_v13 = vpop.xlane.xlu0 %106 }
  0xac   :  { %v110_v14 = vmul.f32 0.03125, %v107_v13  ;;  %v113_v15 = vmul.f32 %v111_v12, %v111_v12 }
  0xae   :  { %v112_v16 = vsub.f32 %v98_v7, %v110_v14  ;;  %v115_v17 = vsel %vm101_vm0, %v113_v15, 0.0 }
  0xaf   :  { %116 = vadd.xlane.f32.xlu1 %v115_v17  ;;  %v3686_v17 = vld [vmem:[%s4184_s2 + $0x1] ss:$0 sm:$0xff] }
  0xb0   :  { %v114_v18 = vmul.f32 %v112_v16, %v112_v16 }
  0xb2   :  { %v118_v19 = vsel %vm101_vm0, %v114_v18, 0.0 }
  0xb3   :  { %119 = vadd.xlane.f32.xlu1 %v118_v19 }
 0x13c   :  { %v117_v25 = vpop.xlane.xlu1 %116 }
 0x13d   :  { %v121_v26 = vmul.f32 0.03125, %v117_v25 }
 0x13f   :  { %v123_v27 = vadd.f32 1e-12, %v121_v26 }
 0x140   :  { %v120_v28 = vpop.xlane.xlu1 %119 }
 0x141   :  { %3357 = vrsqrt.f32 %v123_v27  ;;  %v122_v29 = vmul.f32 0.03125, %v120_v28 }
 0x143   :  { %v124_v30 = vadd.f32 1e-12, %v122_v29 }
 0x145   :  { %3359 = vrsqrt.f32 %v124_v30 }
 0x14b   :  { %v3358_v31 = vpop.eup %3357 }
 0x14c   :  { %v127_v32 = vmul.f32 %v3358_v31, %v111_v12  ;;  %v3681_v12 = vld [vmem:[%s4184_s2] ss:$0 sm:$0xff] }
 0x14e   :  { %v135_v35 = vmul.f32 %v2756_v33, %v127_v32 }
 0x14f   :  { %v3360_v34 = vpop.eup %3359 }
 0x150   :  { %v128_v36 = vmul.f32 %v3360_v34, %v112_v16  ;;  %v3627_v39 = vadd.f32 %v2757_v37, %v135_v35 }
 0x152   :  { %v136_v38 = vmul.f32 %v2756_v33, %v128_v36 }
 0x154   :  { %v3629_v40 = vadd.f32 %v2757_v37, %v136_v38 }
 0x156   :  { %v3636_v42 = vpack.c.bf16 %v3629_v40, %v3627_v39 }
 0x158   :  { %3043 = vmatmul.mubr.msk.bf16.vlgmr.msra.gmra.mrb[0].mxu0 %vm101_vm0, %v3636_v42  ;;  %3051 = vmatmul.mubr.msk.bf16.vlgmr.msra.gmra.mrb[0].mxu1 %vm101_vm0, %v3636_v42 }
 0x159   :  { %3055 = vmatpush3.bf16.msra.mxu0 %v3317_v41  ;;  %3058 = vmatprep.mubr.msk.bf16.mxu0 %vm3446_vm1, %v3445_v22 }
 0x15a   :  { %3056 = vmatprep.subr.bf16.mxu0 %v3445_v22  ;;  %3064 = vmatprep.mubr.msk.bf16.mxu1 %vm3446_vm1, %v3445_v22 }
 0x15d   :  { %3057 = vmatpush3.bf16.msra.mxu0 %v3318_v43 }
 0x15e   :  { %3068 = vmatprep.subr.bf16.mxu0 %v3445_v22 }
 0x160   :  { %3059 = vmatmul.mubr.msk.bf16.vlgmr.msra.gmra.mrb[4].mxu0 %vm101_vm0, %v3636_v42 }
 0x161   :  { %3070 = vmatprep.mubr.msk.bf16.mxu0 %vm3446_vm1, %v3445_v22 }
 0x22b   :  { %v208_v45 = vpop.f32.mrb[0].mxu0  ;;  %v272_v46 = vpop.f32.mrb[0].mxu1 }
 0x22c   :  { %v273_v47 = vadd.f32 %v2762_v44, %v272_v46  ;;  %v3044_v48 = vpop.f32.mrb[1].mxu0  ;;  %v3052_v49 = vpop.f32.mrb[1].mxu1  ;;  %v209_v60 = vadd.f32 %v2758_v56, %v208_v45  ;;  %v3319_v46 = vld [vmem:[%s4177_s5 + $0x10] sm:$0xff]  }
 0x22d   :  { %v211_v50 = vpop.f32.mrb[2].mxu0  ;;  %v275_v51 = vpop.f32.mrb[2].mxu1  ;;  %v3320_v49 = vld [vmem:[%s4178_s1 + $0x10] sm:$0xff]  }
 0x22e   :  { %v345_v52 = vpack.c.bf16 %v273_v47, %v273_v47  ;;  %v276_v53 = vadd.f32 %v2762_v44, %v275_v51  ;;  %v3045_v54 = vpop.f32.mrb[3].mxu0  ;;  %v3053_v55 = vpop.f32.mrb[3].mxu1  ;;  %v212_v63 = vadd.f32 %v2758_v56, %v211_v50  ;;  %v343_v3 = vpack.c.bf16 %v209_v60, %v209_v60  ;;  %v3321_v51 = vld [vmem:[%s4177_s5 + $0x18] sm:$0xff]  }
 0x22f   :  { %v3324_v54 = vld [vmem:[%s4181_s10 + $0x18] sm:$0xff]  }
 0x230   :  { %v354_v57 = vsel %vm349_vm2, %v345_v52, 0  ;;  %v346_v58 = vpack.c.bf16 %v276_v53, %v276_v53  ;;  %v344_v7 = vpack.c.bf16 %v212_v63, %v212_v63  ;;  %v3322_v52 = vld [vmem:[%s4178_s1 + $0x18] sm:$0xff]   ;;  %v3323_v53 = vld [vmem:[%s4181_s10 + $0x10] sm:$0xff]  }
 0x231   :  { %3063 = vmatpush3.bf16.xpose.msra.mxu1 %v354_v57 }
 0x232   :  { %v400_v61 = vsel %vm349_vm2, %v346_v58, 0  ;;  %3074 = vmatprep.subr.bf16.mxu1 %v3445_v22 }
 0x233   :  { %v336_v62 = vpop.f32.mrb[4].mxu0  ;;  %3069 = vmatpush3.bf16.xpose.msra.mxu0 %v400_v61 }
 0x234   :  { %v337_v0 = vadd.f32 %v2766_v59, %v336_v62  ;;  %v3060_v1 = vpop.f32.mrb[5].mxu0  ;;  %3080 = vmatprep.subr.bf16.mxu0 %v3445_v22 }
 0x235   :  { %v339_v2 = vpop.f32.mrb[6].mxu0 }
 0x236   :  { %v347_v4 = vpack.c.bf16 %v337_v0, %v337_v0  ;;  %v340_v5 = vadd.f32 %v2766_v59, %v339_v2  ;;  %v3061_v6 = vpop.f32.mrb[7].mxu0 }
 0x238   :  { %v488_v8 = vsel %vm486_vm3, %v347_v4, 0  ;;  %v348_v9 = vpack.c.bf16 %v340_v5, %v340_v5  ;;  %3065 = vmatmul.mubr.msk.bf16.vlgmr.msra.gmra.mrb[4].mxu1 %vm349_vm2, %v343_v3 }
 0x239   :  { %3075 = vmatpush3.bf16.msra.mxu1 %v488_v8  ;;  %3076 = vmatprep.mubr.msk.bf16.mxu1 %vm3446_vm1, %v3445_v22 }
 0x23a   :  { %v534_v10 = vsel %vm486_vm3, %v348_v9, 0  ;;  %3071 = vmatmul.mubr.msk.bf16.vlgmr.msra.gmra.mrb[8].mxu0 %vm349_vm2, %v344_v7  ;;  %3086 = vmatprep.subr.bf16.mxu1 %v3445_v22 }
 0x23b   :  { %3081 = vmatpush3.bf16.msra.mxu0 %v534_v10  ;;  %3082 = vmatprep.mubr.msk.bf16.mxu0 %vm3446_vm1, %v3445_v22 }
 0x23c   :  { %3094 = vmatprep.subr.bf16.mxu0 %v3445_v22 }
 0x30b   :  { %v390_v11 = vpop.f32.mrb[4].mxu1 }
 0x30c   :  { %v442_v13 = vmul.f32 0.25, %v390_v11  ;;  %v3066_v14 = vpop.f32.mrb[5].mxu1  ;;  %v2781_v11 = vld [vmem:[%s4183_s29 + $0x1] ss:$0 sm:$0xff] }
 0x30d   :  { %v393_v15 = vpop.f32.mrb[6].mxu1  ;;  %v436_v16 = vpop.f32.mrb[8].mxu0 }
 0x30e   :  { %v443_v18 = vmul.f32 0.25, %v436_v16  ;;  %v3067_v19 = vpop.f32.mrb[7].mxu1  ;;  %v3072_v20 = vpop.f32.mrb[9].mxu0  ;;  %v456_v21 = vadd.f32 %v3681_v12, %v442_v13  ;;  %v2799_v13 = vld [vmem:[%s4138_s11 + $0x1] ss:$0 sm:$0xff] }
 0x30f   :  { %v439_v23 = vpop.f32.mrb[10].mxu0 }
 0x310   :  { %v3073_v24 = vpop.f32.mrb[11].mxu0  ;;  %v459_v25 = vsel %vm458_vm4, %v456_v21, -inf  ;;  %v457_v26 = vadd.f32 %v3686_v17, %v443_v18 }
 0x311   :  { %460 = vmax.xlane.f32.xlu1 %v459_v25 }
 0x312   :  { %v462_v27 = vsel %vm458_vm4, %v457_v26, -inf }
 0x313   :  { %463 = vmax.xlane.f32.xlu0 %v462_v27 }
 0x39e   :  { %v461_v28 = vpop.xlane.xlu1 %460 }
 0x39f   :  { %v465_v29 = vsub.f32 %v456_v21, %v461_v28 }
 0x3a0   :  { %v464_v30 = vpop.xlane.xlu0 %463 }
 0x3a1   :  { %v467_v31 = vmul.f32 1.442695, %v465_v29  ;;  %v466_v32 = vsub.f32 %v457_v26, %v464_v30 }
 0x3a3   :  { %3361 = vpow2.f32 %v467_v31  ;;  %v469_v33 = vmul.f32 1.442695, %v466_v32 }
 0x3a5   :  { %3363 = vpow2.f32 %v469_v33 }
 0x3ad   :  { %v3362_v34 = vpop.eup %3361 }
 0x3ae   :  { %v471_v35 = vsel %vm458_vm4, %v3362_v34, 0.0 }
 0x3af   :  { %v3364_v36 = vpop.eup %3363  ;;  %472 = vadd.xlane.f32.xlu1 %v471_v35 }
 0x3b0   :  { %v474_v37 = vsel %vm458_vm4, %v3364_v36, 0.0 }
 0x3b1   :  { %475 = vadd.xlane.f32.xlu0 %v474_v37 }
 0x43c   :  { %v473_v38 = vpop.xlane.xlu1 %472 }
 0x43d   :  { %3365 = vrcp.f32 %v473_v38 }
 0x43e   :  { %v476_v41 = vpop.xlane.xlu0 %475 }
 0x43f   :  { %3367 = vrcp.f32 %v476_v41 }
 0x447   :  { %v3366_v43 = vpop.eup %3365 }
 0x448   :  { %v479_v44 = vmul.f32 %v3366_v43, %v3362_v34 }
 0x449   :  { %v3368_v45 = vpop.eup %3367 }
 0x44a   :  { %v480_v47 = vmul.f32 %v3368_v45, %v3364_v36  ;;  %v481_v48 = vpack.c.bf16 %v479_v44, %v479_v44 }
 0x44c   :  { %3077 = vmatmul.mubr.msk.bf16.vlgmr.msra.gmra.mrb[8].mxu1 %vm458_vm4, %v481_v48  ;;  %v482_v50 = vpack.c.bf16 %v480_v47, %v480_v47 }
 0x44d   :  { %3087 = vmatpush3.bf16.msra.mxu1 %v3319_v46  ;;  %3090 = vmatprep.mubr.msk.bf16.mxu1 %vm3446_vm1, %v3445_v22 }
 0x44e   :  { %3083 = vmatmul.mubr.msk.bf16.vlgmr.msra.gmra.mrb[12].mxu0 %vm458_vm4, %v482_v50  ;;  %3088 = vmatprep.subr.bf16.mxu1 %v3445_v22 }
 0x44f   :  { %3095 = vmatpush3.bf16.msra.mxu0 %v3320_v49  ;;  %3098 = vmatprep.mubr.msk.bf16.mxu0 %vm3446_vm1, %v3445_v22 }
 0x450   :  { %3096 = vmatprep.subr.bf16.mxu0 %v3445_v22 }
 0x451   :  { %3089 = vmatpush3.bf16.msra.mxu1 %v3321_v51 }
 0x452   :  { %3102 = vmatprep.subr.bf16.mxu1 %v3445_v22 }
 0x453   :  { %3097 = vmatpush3.bf16.msra.mxu0 %v3322_v52 }
 0x454   :  { %3091 = vmatmul.mubr.msk.bf16.vlgmr.msra.gmra.mrb[12].mxu1 %vm101_vm0, %v3636_v42  ;;  %3110 = vmatprep.subr.bf16.mxu0 %v3445_v22 }
 0x455   :  { %3103 = vmatpush3.bf16.msra.mxu1 %v3323_v53  ;;  %3106 = vmatprep.mubr.msk.bf16.mxu1 %vm3446_vm1, %v3445_v22 }
 0x456   :  { %3099 = vmatmul.mubr.msk.bf16.vlgmr.msra.gmra.mrb[16].mxu0 %vm101_vm0, %v3636_v42  ;;  %3104 = vmatprep.subr.bf16.mxu1 %v3445_v22 }
 0x457   :  { %3112 = vmatprep.mubr.msk.bf16.mxu0 %vm3446_vm1, %v3445_v22 }
 0x459   :  { %3105 = vmatpush3.bf16.msra.mxu1 %v3324_v54 }
 0x45a   :  { %3116 = vmatprep.subr.bf16.mxu1 %v3445_v22 }
 0x45c   :  { %3107 = vmatmul.mubr.msk.bf16.vlgmr.msra.gmra.mrb[16].mxu1 %vm101_vm0, %v3636_v42  ;;  %v2790_v42 = vld [vmem:[%s4182_s28 + $0x1] ss:$0 sm:$0xff] }
 0x45d   :  { %3118 = vmatprep.mubr.msk.bf16.mxu1 %vm3446_vm1, %v3445_v22 }
 0x51f   :  { %v3736_v55 = vpop.f32.mrb[8].mxu1 }
 0x520   :  { %v3078_v56 = vpop.f32.mrb[9].mxu1 }
 0x521   :  { %v527_v57 = vpop.f32.mrb[10].mxu1  ;;  %v3738_v58 = vpop.f32.mrb[12].mxu0 }
 0x522   :  { %v576_v59 = vpack.c.bf16 %v3738_v58, %v3736_v55  ;;  %v3079_v60 = vpop.f32.mrb[11].mxu1  ;;  %v3084_v61 = vpop.f32.mrb[13].mxu0 }
 0x523   :  { %v573_v62 = vpop.f32.mrb[14].mxu0 }
 0x524   :  { %v3085_v63 = vpop.f32.mrb[15].mxu0 }
 0x527   :  { %v638_v0 = vpop.f32.mrb[12].mxu1 }
 0x528   :  { %v3092_v1 = vpop.f32.mrb[13].mxu1  ;;  %v639_v18 = vadd.f32 %v2781_v11, %v638_v0 }
 0x529   :  { %v641_v2 = vpop.f32.mrb[14].mxu1  ;;  %v704_v3 = vpop.f32.mrb[16].mxu0 }
 0x52a   :  { %v705_v4 = vadd.f32 %v2790_v42, %v704_v3  ;;  %v3093_v5 = vpop.f32.mrb[15].mxu1  ;;  %v3100_v6 = vpop.f32.mrb[17].mxu0  ;;  %v642_v24 = vadd.f32 %v2781_v11, %v641_v2  ;;  %v777_v28 = vpack.c.bf16 %v639_v18, %v639_v18  ;;  %v3326_v3 = vld [vmem:[%s4139_s12 + $0x8] sm:$0xff]  }
 0x52b   :  { %v707_v7 = vpop.f32.mrb[18].mxu0  ;;  %v3325_v6 = vld [vmem:[%s4139_s12] sm:$0xff]  }
 0x52c   :  { %v779_v8 = vpack.c.bf16 %v705_v4, %v705_v4  ;;  %v708_v9 = vadd.f32 %v2790_v42, %v707_v7  ;;  %v3101_v10 = vpop.f32.mrb[19].mxu0  ;;  %v778_v30 = vpack.c.bf16 %v642_v24, %v642_v24 }
 0x52e   :  { %v787_v14 = vsel %vm349_vm2, %v779_v8, 0  ;;  %v780_v15 = vpack.c.bf16 %v708_v9, %v708_v9 }
 0x52f   :  { %v770_v16 = vpop.f32.mrb[16].mxu1  ;;  %3111 = vmatpush3.bf16.xpose.msra.mxu0 %v787_v14 }
 0x530   :  { %v833_v19 = vsel %vm349_vm2, %v780_v15, 0  ;;  %v771_v20 = vadd.f32 %v2799_v13, %v770_v16  ;;  %v3108_v21 = vpop.f32.mrb[17].mxu1  ;;  %3122 = vmatprep.subr.bf16.mxu0 %v3445_v22 }
 0x531   :  { %v773_v23 = vpop.f32.mrb[18].mxu1  ;;  %3117 = vmatpush3.bf16.xpose.msra.mxu1 %v833_v19  ;;  %v2813_v21 = vld [vmem:[%s4140_s13] ss:$0 sm:$0xff] }
 0x532   :  { %v781_v25 = vpack.c.bf16 %v771_v20, %v771_v20  ;;  %v774_v26 = vadd.f32 %v2799_v13, %v773_v23  ;;  %v3109_v27 = vpop.f32.mrb[19].mxu1  ;;  %3128 = vmatprep.subr.bf16.mxu1 %v3445_v22 }
 0x534   :  { %v782_v29 = vpack.c.bf16 %v774_v26, %v774_v26  ;;  %v907_v31 = vsel %vm486_vm3, %v781_v25, 0 }
 0x536   :  { %3113 = vmatmul.mubr.msk.bf16.vlgmr.msra.gmra.mrb[20].mxu0 %vm349_vm2, %v777_v28  ;;  %v953_v32 = vsel %vm486_vm3, %v782_v29, 0 }
 0x537   :  { %3123 = vmatpush3.bf16.msra.mxu0 %v907_v31  ;;  %3124 = vmatprep.mubr.msk.bf16.mxu0 %vm3446_vm1, %v3445_v22 }
 0x538   :  { %3119 = vmatmul.mubr.msk.bf16.vlgmr.msra.gmra.mrb[20].mxu1 %vm349_vm2, %v778_v30  ;;  %3134 = vmatprep.subr.bf16.mxu0 %v3445_v22 }
 0x539   :  { %3129 = vmatpush3.bf16.msra.mxu1 %v953_v32  ;;  %3130 = vmatprep.mubr.msk.bf16.mxu1 %vm3446_vm1, %v3445_v22 }
 0x53a   :  { %3140 = vmatprep.subr.bf16.mxu1 %v3445_v22 }
 0x609   :  { %v823_v33 = vpop.f32.mrb[20].mxu0 }
 0x60a   :  { %v875_v34 = vmul.f32 0.25, %v823_v33  ;;  %v3114_v35 = vpop.f32.mrb[21].mxu0 }
 0x60b   :  { %v826_v36 = vpop.f32.mrb[22].mxu0  ;;  %v869_v37 = vpop.f32.mrb[20].mxu1 }
 0x60c   :  { %v876_v38 = vmul.f32 0.25, %v869_v37  ;;  %v3115_v41 = vpop.f32.mrb[23].mxu0  ;;  %v3120_v43 = vpop.f32.mrb[21].mxu1  ;;  %v877_v44 = vadd.f32 %v3681_v12, %v875_v34 }
 0x60d   :  { %v872_v45 = vpop.f32.mrb[22].mxu1 }
 0x60e   :  { %v3121_v46 = vpop.f32.mrb[23].mxu1  ;;  %v879_v47 = vsel %vm458_vm4, %v877_v44, -inf  ;;  %v878_v48 = vadd.f32 %v3686_v17, %v876_v38 }
 0x60f   :  { %880 = vmax.xlane.f32.xlu0 %v879_v47  ;;  %v3328_v46 = vld [vmem:[%s4143_s16 + $0x8] sm:$0xff]  }
 0x610   :  { %v882_v49 = vsel %vm458_vm4, %v878_v48, -inf }
 0x611   :  { %883 = vmax.xlane.f32.xlu1 %v882_v49 }
 0x69c   :  { %v881_v50 = vpop.xlane.xlu0 %880 }
 0x69d   :  { %v885_v51 = vsub.f32 %v877_v44, %v881_v50 }
 0x69e   :  { %v884_v52 = vpop.xlane.xlu1 %883 }
 0x69f   :  { %v887_v53 = vmul.f32 1.442695, %v885_v51  ;;  %v886_v54 = vsub.f32 %v878_v48, %v884_v52 }
 0x6a1   :  { %3369 = vpow2.f32 %v887_v53  ;;  %v889_v56 = vmul.f32 1.442695, %v886_v54  ;;  %v2814_v54 = vld [vmem:[%s4141_s14] ss:$0 sm:$0xff] }
 0x6a3   :  { %3371 = vpow2.f32 %v889_v56 }
 0x6ab   :  { %v3370_v57 = vpop.eup %3369 }
 0x6ac   :  { %v891_v60 = vsel %vm458_vm4, %v3370_v57, 0.0 }
 0x6ad   :  { %v3372_v61 = vpop.eup %3371  ;;  %892 = vadd.xlane.f32.xlu0 %v891_v60 }
 0x6ae   :  { %v894_v62 = vsel %vm458_vm4, %v3372_v61, 0.0 }
 0x6af   :  { %895 = vadd.xlane.f32.xlu1 %v894_v62  ;;  %v2815_v62 = vld [vmem:[%s4142_s15] ss:$0 sm:$0xff] }
 0x73a   :  { %v893_v63 = vpop.xlane.xlu0 %892 }
 0x73b   :  { %3373 = vrcp.f32 %v893_v63 }
 0x73c   :  { %v896_v0 = vpop.xlane.xlu1 %895 }
 0x73d   :  { %3375 = vrcp.f32 %v896_v0 }
 0x745   :  { %v3374_v42 = vpop.eup %3373 }
 0x746   :  { %v899_v1 = vmul.f32 %v3374_v42, %v3370_v57 }
 0x747   :  { %v3376_v2 = vpop.eup %3375 }
 0x748   :  { %v900_v4 = vmul.f32 %v3376_v2, %v3372_v61  ;;  %v901_v5 = vpack.c.bf16 %v899_v1, %v899_v1  ;;  %v3329_v2 = vld [vmem:[%s4145_s18] sm:$0xff]  }
 0x74a   :  { %3125 = vmatmul.mubr.msk.bf16.vlgmr.msra.gmra.mrb[24].mxu0 %vm458_vm4, %v901_v5  ;;  %v902_v7 = vpack.c.bf16 %v900_v4, %v900_v4  ;;  %v3331_v4 = vld [vmem:[%s4145_s18 + $0x10] sm:$0xff]   ;;  %v3332_v5 = vld [vmem:[%s4145_s18 + $0x18] sm:$0xff]  }
 0x74b   :  { %3135 = vmatpush3.bf16.msra.mxu0 %v3326_v3  ;;  %3136 = vmatprep.mubr.msk.bf16.mxu0 %vm3446_vm1, %v3445_v22  ;;  %v3330_v3 = vld [vmem:[%s4145_s18 + $0x8] sm:$0xff]  }
 0x74c   :  { %3131 = vmatmul.mubr.msk.bf16.vlgmr.msra.gmra.mrb[24].mxu1 %vm458_vm4, %v902_v7  ;;  %3146 = vmatprep.subr.bf16.mxu0 %v3445_v22 }
 0x74d   :  { %3141 = vmatpush3.bf16.msra.mxu1 %v3325_v6  ;;  %3142 = vmatprep.mubr.msk.bf16.mxu1 %vm3446_vm1, %v3445_v22  ;;  %v2816_v6 = vld [vmem:[%s4144_s17] ss:$0 sm:$0xff] }
 0x74e   :  { %3154 = vmatprep.subr.bf16.mxu1 %v3445_v22 }
 0x754   :  { %3143 = vmatmul.mubr.msk.bf16.vlgmr.msra.gmra.mrb[28].mxu1 %vm349_vm2, %v576_v59 }
 0x755   :  { %3162 = vmatprep.mubr.msk.bf16.mxu1 %vm3446_vm1, %v3445_v22  ;;  %3155 = vmatpush3.bf16.msra.mxu1 %v3329_v2 }
 0x756   :  { %3156 = vmatprep.subr.bf16.mxu1 %v3445_v22 }
 0x759   :  { %3157 = vmatpush3.bf16.msra.mxu1 %v3330_v3  ;;  %v2826_v3 = vld [vmem:[%s4147_s20] ss:$0 sm:$0xff] }
 0x75a   :  { %3158 = vmatprep.subr.bf16.mxu1 %v3445_v22 }
 0x75d   :  { %3159 = vmatpush3.bf16.msra.mxu1 %v3331_v4 }
 0x75e   :  { %3160 = vmatprep.subr.bf16.mxu1 %v3445_v22 }
 0x761   :  { %3161 = vmatpush3.bf16.msra.mxu1 %v3332_v5 }
 0x762   :  { %3182 = vmatprep.subr.bf16.mxu1 %v3445_v22 }
 0x81d   :  { %v943_v8 = vpop.f32.mrb[24].mxu0 }
 0x81e   :  { %v3126_v9 = vpop.f32.mrb[25].mxu0 }
 0x81f   :  { %v946_v10 = vpop.f32.mrb[26].mxu0  ;;  %v989_v11 = vpop.f32.mrb[24].mxu1 }
 0x820   :  { %v995_v13 = vpack.c.bf16 %v989_v11, %v943_v8  ;;  %v3127_v14 = vpop.f32.mrb[27].mxu0  ;;  %v3132_v15 = vpop.f32.mrb[25].mxu1 }
 0x821   :  { %v992_v16 = vpop.f32.mrb[26].mxu1 }
 0x822   :  { %v3133_v18 = vpop.f32.mrb[27].mxu1  ;;  %3137 = vmatmul.mubr.msk.bf16.vlgmr.msra.gmra.mrb[28].mxu0 %vm349_vm2, %v995_v13 }
 0x823   :  { %3150 = vmatprep.mubr.msk.bf16.mxu0 %vm3446_vm1, %v3445_v22 }
 0x827   :  { %v1092_v55 = vpop.f32.mrb[28].mxu1 }
 0x828   :  { %v3144_v58 = vpop.f32.mrb[29].mxu1 }
 0x829   :  { %v1095_v59 = vpop.f32.mrb[30].mxu1 }
 0x82a   :  { %v3145_v19 = vpop.f32.mrb[31].mxu1 }
 0x8f5   :  { %v1042_v20 = vpop.f32.mrb[28].mxu0 }
 0x8f6   :  { %v1093_v23 = vadd.f32 %v1092_v55, %v1042_v20  ;;  %v3138_v24 = vpop.f32.mrb[29].mxu0 }
 0x8f7   :  { %v1045_v25 = vpop.f32.mrb[30].mxu0 }
 0x8f8   :  { %v1106_v26 = vadd.f32 %v2813_v21, %v1093_v23  ;;  %v1096_v27 = vadd.f32 %v1095_v59, %v1045_v25  ;;  %v3139_v28 = vpop.f32.mrb[31].mxu0 }
 0x8fa   :  { %v1107_v29 = vadd.f32 %v2813_v21, %v1096_v27  ;;  %v1108_v30 = vadd.f32 %v1106_v26, %v3627_v39 }
 0x8fc   :  { %v1112_v31 = vsel %vm101_vm0, %v1108_v30, 0.0  ;;  %v1109_v32 = vadd.f32 %v1107_v29, %v3629_v40  ;;  %v3327_v40 = vld [vmem:[%s4143_s16] sm:$0xff]  }
 0x8fd   :  { %1113 = vadd.xlane.f32.xlu0 %v1112_v31  ;;  %3147 = vmatpush3.bf16.msra.mxu0 %v3327_v40 }
 0x8fe   :  { %v1115_v33 = vsel %vm101_vm0, %v1109_v32, 0.0  ;;  %3148 = vmatprep.subr.bf16.mxu0 %v3445_v22 }
 0x8ff   :  { %1116 = vadd.xlane.f32.xlu1 %v1115_v33 }
 0x901   :  { %3149 = vmatpush3.bf16.msra.mxu0 %v3328_v46 }
 0x902   :  { %3166 = vmatprep.subr.bf16.mxu0 %v3445_v22 }
 0x98a   :  { %v1114_v34 = vpop.xlane.xlu0 %1113 }
 0x98b   :  { %v1118_v35 = vmul.f32 0.03125, %v1114_v34 }
 0x98c   :  { %v1117_v36 = vpop.xlane.xlu1 %1116 }
 0x98d   :  { %v1120_v37 = vsub.f32 %v1108_v30, %v1118_v35  ;;  %v1119_v38 = vmul.f32 0.03125, %v1117_v36 }
 0x98f   :  { %v1121_v41 = vsub.f32 %v1109_v32, %v1119_v38  ;;  %v1122_v43 = vmul.f32 %v1120_v37, %v1120_v37  ;;  %v2820_v32 = vld [vmem:[%s4146_s19] ss:$0 sm:$0xff] }
 0x991   :  { %v1124_v44 = vsel %vm101_vm0, %v1122_v43, 0.0  ;;  %v1123_v45 = vmul.f32 %v1121_v41, %v1121_v41 }
 0x992   :  { %1125 = vadd.xlane.f32.xlu0 %v1124_v44 }
 0x993   :  { %v1127_v39 = vsel %vm101_vm0, %v1123_v45, 0.0 }
 0x994   :  { %1128 = vadd.xlane.f32.xlu1 %v1127_v39 }
 0xa1f   :  { %v1126_v47 = vpop.xlane.xlu0 %1125 }
 0xa20   :  { %v1130_v48 = vmul.f32 0.03125, %v1126_v47 }
 0xa21   :  { %v1129_v49 = vpop.xlane.xlu1 %1128 }
 0xa22   :  { %v1132_v50 = vadd.f32 1e-12, %v1130_v48  ;;  %v1131_v51 = vmul.f32 0.03125, %v1129_v49 }
 0xa24   :  { %3377 = vrsqrt.f32 %v1132_v50  ;;  %v1133_v52 = vadd.f32 1e-12, %v1131_v51 }
 0xa26   :  { %3379 = vrsqrt.f32 %v1133_v52 }
 0xa2e   :  { %v3378_v53 = vpop.eup %3377 }
 0xa2f   :  { %v1136_v56 = vmul.f32 %v3378_v53, %v1120_v37 }
 0xa30   :  { %v3380_v57 = vpop.eup %3379 }
 0xa31   :  { %v1144_v60 = vmul.f32 %v2814_v54, %v1136_v56  ;;  %v1137_v61 = vmul.f32 %v3380_v57, %v1121_v41  ;;  %v3334_v56 = vld [vmem:[%s4181_s10 + $0x20] sm:$0xff]   ;;  %v3335_v57 = vld [vmem:[%s4177_s5 + $0x28] sm:$0xff]  }
 0xa33   :  { %v1145_v63 = vmul.f32 %v2814_v54, %v1137_v61  ;;  %v1152_v0 = vadd.f32 %v2815_v62, %v1144_v60  ;;  %v3333_v54 = vld [vmem:[%s4177_s5 + $0x20] sm:$0xff]   ;;  %v3336_v60 = vld [vmem:[%s4181_s10 + $0x28] sm:$0xff]  }
 0xa35   :  { %v1153_v42 = vadd.f32 %v2815_v62, %v1145_v63 }
 0xa37   :  { %v1154_v1 = vpack.c.bf16 %v1153_v42, %v1152_v0 }
 0xa39   :  { %3151 = vmatmul.mubr.msk.bf16.vlgmr.msra.gmra.mrb[32].mxu0 %vm101_vm0, %v1154_v1 }
 0xa3a   :  { %3170 = vmatprep.mubr.msk.bf16.mxu0 %vm3446_vm1, %v3445_v22  ;;  %3167 = vmatpush3.bf16.msra.mxu0 %v3333_v54 }
 0xa3b   :  { %3168 = vmatprep.subr.bf16.mxu0 %v3445_v22 }
 0xa3e   :  { %3169 = vmatpush3.bf16.msra.mxu0 %v3335_v57 }
 0xa3f   :  { %3174 = vmatprep.subr.bf16.mxu0 %v3445_v22 }
 0xb0c   :  { %v1215_v7 = vpop.f32.mrb[32].mxu0 }
 0xb0d   :  { %v1216_v8 = vadd.f32 %v2816_v6, %v1215_v7  ;;  %v3152_v9 = vpop.f32.mrb[33].mxu0 }
 0xb0e   :  { %v1218_v10 = vpop.f32.mrb[34].mxu0 }
 0xb0f   :  { %v1224_v11 = vmul.f32 0.044715, %v1216_v8  ;;  %v1219_v13 = vadd.f32 %v2816_v6, %v1218_v10  ;;  %v3153_v14 = vpop.f32.mrb[35].mxu0  ;;  %v1222_v26 = vmul.f32 0.5, %v1216_v8 }
 0xb11   :  { %v1226_v15 = vmul.f32 %v1224_v11, %v1216_v8  ;;  %v1225_v16 = vmul.f32 0.044715, %v1219_v13  ;;  %v1223_v27 = vmul.f32 0.5, %v1219_v13 }
 0xb13   :  { %v1228_v18 = vmul.f32 %v1226_v15, %v1216_v8  ;;  %v1227_v55 = vmul.f32 %v1225_v16, %v1219_v13  ;;  %v3338_v15 = vld [vmem:[%s4178_s1 + $0x28] sm:$0xff]  }
 0xb15   :  { %v1230_v58 = vadd.f32 %v1228_v18, %v1216_v8  ;;  %v1229_v59 = vmul.f32 %v1227_v55, %v1219_v13  ;;  %v2827_v8 = vld [vmem:[%s4185_s30] ss:$0 sm:$0xff] }
 0xb17   :  { %v1232_v19 = vmul.f32 0.7978846, %v1230_v58  ;;  %v1231_v20 = vadd.f32 %v1229_v59, %v1219_v13  ;;  %v3337_v13 = vld [vmem:[%s4178_s1 + $0x20] sm:$0xff]  }
 0xb19   :  { %3381 = vtanh.f32 %v1232_v19  ;;  %v1233_v21 = vmul.f32 0.7978846, %v1231_v20 }
 0xb1b   :  { %3383 = vtanh.f32 %v1233_v21 }
 0xb23   :  { %v3382_v23 = vpop.eup %3381 }
 0xb24   :  { %v1236_v24 = vadd.f32 1.0, %v3382_v23  ;;  %v2842_v23 = vld [vmem:[%s4182_s28 + $0x2] ss:$0 sm:$0xff] }
 0xb25   :  { %v3384_v25 = vpop.eup %3383 }
 0xb26   :  { %v1237_v28 = vadd.f32 1.0, %v3384_v25  ;;  %v1238_v29 = vmul.f32 %v1236_v24, %v1222_v26 }
 0xb28   :  { %v1239_v30 = vmul.f32 %v1237_v28, %v1223_v27  ;;  %v2851_v27 = vld [vmem:[%s4138_s11 + $0x2] ss:$0 sm:$0xff] }
 0xb2a   :  { %v1240_v31 = vpack.c.bf16 %v1239_v30, %v1238_v29 }
 0xb2c   :  { %3163 = vmatmul.mubr.msk.bf16.vlgmr.msra.gmra.mrb[32].mxu1 %vm1280_vm5, %v1240_v31 }
 0xb2d   :  { %3186 = vmatprep.mubr.msk.bf16.mxu1 %vm3446_vm1, %v3445_v22  ;;  %3183 = vmatpush3.bf16.msra.mxu1 %v3334_v56 }
 0xb2e   :  { %3184 = vmatprep.subr.bf16.mxu1 %v3445_v22 }
 0xb31   :  { %3185 = vmatpush3.bf16.msra.mxu1 %v3336_v60 }
 0xb32   :  { %3196 = vmatprep.subr.bf16.mxu1 %v3445_v22 }
 0xbff   :  { %v1318_v33 = vpop.f32.mrb[32].mxu1 }
 0xc00   :  { %v1319_v34 = vadd.f32 %v2820_v32, %v1318_v33  ;;  %v3164_v35 = vpop.f32.mrb[33].mxu1 }
 0xc01   :  { %v1321_v36 = vpop.f32.mrb[34].mxu1 }
 0xc02   :  { %v1322_v37 = vadd.f32 %v2820_v32, %v1321_v36  ;;  %v3165_v38 = vpop.f32.mrb[35].mxu1  ;;  %v1325_v41 = vadd.f32 %v1319_v34, %v1152_v0  ;;  %v2833_v32 = vld [vmem:[%s4183_s29 + $0x2] ss:$0 sm:$0xff] }
 0xc04   :  { %v1329_v43 = vsel %vm101_vm0, %v1325_v41, 0.0  ;;  %v1326_v44 = vadd.f32 %v1322_v37, %v1153_v42 }
 0xc05   :  { %1330 = vadd.xlane.f32.xlu0 %v1329_v43 }
 0xc06   :  { %v1332_v45 = vsel %vm101_vm0, %v1326_v44, 0.0 }
 0xc07   :  { %1333 = vadd.xlane.f32.xlu1 %v1332_v45 }
 0xc92   :  { %v1331_v39 = vpop.xlane.xlu0 %1330 }
 0xc93   :  { %v1335_v40 = vmul.f32 0.03125, %v1331_v39 }
 0xc94   :  { %v1334_v46 = vpop.xlane.xlu1 %1333 }
 0xc95   :  { %v1337_v47 = vsub.f32 %v1325_v41, %v1335_v40  ;;  %v1336_v48 = vmul.f32 0.03125, %v1334_v46 }
 0xc97   :  { %v1338_v49 = vsub.f32 %v1326_v44, %v1336_v48  ;;  %v1339_v50 = vmul.f32 %v1337_v47, %v1337_v47 }
 0xc99   :  { %v1341_v51 = vsel %vm101_vm0, %v1339_v50, 0.0  ;;  %v1340_v52 = vmul.f32 %v1338_v49, %v1338_v49 }
 0xc9a   :  { %1342 = vadd.xlane.f32.xlu0 %v1341_v51 }
 0xc9b   :  { %v1344_v53 = vsel %vm101_vm0, %v1340_v52, 0.0 }
 0xc9c   :  { %1345 = vadd.xlane.f32.xlu1 %v1344_v53 }
 0xd27   :  { %v1343_v61 = vpop.xlane.xlu0 %1342 }
 0xd28   :  { %v1347_v62 = vmul.f32 0.03125, %v1343_v61 }
 0xd29   :  { %v1346_v63 = vpop.xlane.xlu1 %1345 }
 0xd2a   :  { %v1349_v0 = vadd.f32 1e-12, %v1347_v62  ;;  %v1348_v42 = vmul.f32 0.03125, %v1346_v63 }
 0xd2c   :  { %3385 = vrsqrt.f32 %v1349_v0  ;;  %v1350_v1 = vadd.f32 1e-12, %v1348_v42 }
 0xd2e   :  { %3387 = vrsqrt.f32 %v1350_v1 }
 0xd36   :  { %v3386_v2 = vpop.eup %3385 }
 0xd37   :  { %v1353_v4 = vmul.f32 %v3386_v2, %v1337_v47 }
 0xd38   :  { %v3388_v5 = vpop.eup %3387 }
 0xd39   :  { %v1361_v6 = vmul.f32 %v2826_v3, %v1353_v4  ;;  %v1354_v7 = vmul.f32 %v3388_v5, %v1338_v49 }
 0xd3b   :  { %v1362_v9 = vmul.f32 %v2826_v3, %v1354_v7  ;;  %v3871_v10 = vadd.f32 %v2827_v8, %v1361_v6 }
 0xd3d   :  { %v3873_v11 = vadd.f32 %v2827_v8, %v1362_v9 }
 0xd3f   :  { %v3880_v14 = vpack.c.bf16 %v3873_v11, %v3871_v10 }
 0xd41   :  { %3171 = vmatmul.mubr.msk.bf16.vlgmr.msra.gmra.mrb[36].mxu0 %vm101_vm0, %v3880_v14  ;;  %3187 = vmatmul.mubr.msk.bf16.vlgmr.msra.gmra.mrb[36].mxu1 %vm101_vm0, %v3880_v14 }
 0xd42   :  { %3175 = vmatpush3.bf16.msra.mxu0 %v3337_v13  ;;  %3178 = vmatprep.mubr.msk.bf16.mxu0 %vm3446_vm1, %v3445_v22 }
 0xd43   :  { %3176 = vmatprep.subr.bf16.mxu0 %v3445_v22  ;;  %3198 = vmatprep.mubr.msk.bf16.mxu1 %vm3446_vm1, %v3445_v22 }
 0xd46   :  { %3177 = vmatpush3.bf16.msra.mxu0 %v3338_v15 }
 0xd47   :  { %3190 = vmatprep.subr.bf16.mxu0 %v3445_v22 }
 0xd49   :  { %3179 = vmatmul.mubr.msk.bf16.vlgmr.msra.gmra.mrb[40].mxu0 %vm101_vm0, %v3880_v14 }
 0xd4a   :  { %3192 = vmatprep.mubr.msk.bf16.mxu0 %vm3446_vm1, %v3445_v22 }
 0xe14   :  { %v1434_v16 = vpop.f32.mrb[36].mxu0  ;;  %v1566_v18 = vpop.f32.mrb[36].mxu1 }
 0xe15   :  { %v3172_v55 = vpop.f32.mrb[37].mxu0  ;;  %v3188_v58 = vpop.f32.mrb[37].mxu1  ;;  %v1567_v33 = vadd.f32 %v2851_v27, %v1566_v18  ;;  %v1435_v36 = vadd.f32 %v2833_v32, %v1434_v16  ;;  %v3339_v16 = vld [vmem:[%s4177_s5 + $0x30] sm:$0xff]  }
 0xe16   :  { %v1437_v59 = vpop.f32.mrb[38].mxu0  ;;  %v1569_v19 = vpop.f32.mrb[38].mxu1  ;;  %v3340_v58 = vld [vmem:[%s4178_s1 + $0x30] sm:$0xff]  }
 0xe17   :  { %v3173_v20 = vpop.f32.mrb[39].mxu0  ;;  %v3189_v21 = vpop.f32.mrb[39].mxu1  ;;  %v1570_v37 = vadd.f32 %v2851_v27, %v1569_v19  ;;  %v1577_v41 = vpack.c.bf16 %v1567_v33, %v1567_v33  ;;  %v1438_v43 = vadd.f32 %v2833_v32, %v1437_v59  ;;  %v1573_v44 = vpack.c.bf16 %v1435_v36, %v1435_v36  ;;  %v3341_v19 = vld [vmem:[%s4177_s5 + $0x38] sm:$0xff]  }
 0xe18   :  { %v3342_v20 = vld [vmem:[%s4178_s1 + $0x38] sm:$0xff]   ;;  %v3343_v21 = vld [vmem:[%s4181_s10 + $0x30] sm:$0xff]  }
 0xe19   :  { %v1578_v45 = vpack.c.bf16 %v1570_v37, %v1570_v37  ;;  %v1703_v39 = vsel %vm486_vm3, %v1577_v41, 0  ;;  %v1574_v40 = vpack.c.bf16 %v1438_v43, %v1438_v43 }
 0xe1b   :  { %v1749_v46 = vsel %vm486_vm3, %v1578_v45, 0 }
 0xe1c   :  { %v1500_v24 = vpop.f32.mrb[40].mxu0 }
 0xe1d   :  { %v1501_v25 = vadd.f32 %v2842_v23, %v1500_v24  ;;  %v3180_v26 = vpop.f32.mrb[41].mxu0 }
 0xe1e   :  { %v1503_v28 = vpop.f32.mrb[42].mxu0 }
 0xe1f   :  { %v1575_v29 = vpack.c.bf16 %v1501_v25, %v1501_v25  ;;  %v1504_v30 = vadd.f32 %v2842_v23, %v1503_v28  ;;  %v3181_v31 = vpop.f32.mrb[43].mxu0  ;;  %v3344_v23 = vld [vmem:[%s4181_s10 + $0x38] sm:$0xff]  }
 0xe21   :  { %v1583_v34 = vsel %vm349_vm2, %v1575_v29, 0  ;;  %v1576_v35 = vpack.c.bf16 %v1504_v30, %v1504_v30 }
 0xe22   :  { %3191 = vmatpush3.bf16.xpose.msra.mxu0 %v1583_v34 }
 0xe23   :  { %v1629_v38 = vsel %vm349_vm2, %v1576_v35, 0  ;;  %3202 = vmatprep.subr.bf16.mxu0 %v3445_v22 }
 0xe24   :  { %3197 = vmatpush3.bf16.xpose.msra.mxu1 %v1629_v38 }
 0xe25   :  { %3208 = vmatprep.subr.bf16.mxu1 %v3445_v22 }
 0xe29   :  { %3193 = vmatmul.mubr.msk.bf16.vlgmr.msra.gmra.mrb[44].mxu0 %vm349_vm2, %v1573_v44 }
 0xe2a   :  { %3203 = vmatpush3.bf16.msra.mxu0 %v1703_v39  ;;  %3204 = vmatprep.mubr.msk.bf16.mxu0 %vm3446_vm1, %v3445_v22 }
 0xe2b   :  { %3199 = vmatmul.mubr.msk.bf16.vlgmr.msra.gmra.mrb[40].mxu1 %vm349_vm2, %v1574_v40  ;;  %3214 = vmatprep.subr.bf16.mxu0 %v3445_v22  ;;  %v2866_v40 = vld [vmem:[%s4183_s29 + $0x3] ss:$0 sm:$0xff] }
 0xe2c   :  { %3209 = vmatpush3.bf16.msra.mxu1 %v1749_v46  ;;  %3210 = vmatprep.mubr.msk.bf16.mxu1 %vm3446_vm1, %v3445_v22  ;;  %v2884_v46 = vld [vmem:[%s4138_s11 + $0x3] ss:$0 sm:$0xff] }
 0xe2d   :  { %3222 = vmatprep.subr.bf16.mxu1 %v3445_v22 }
 0xefc   :  { %v1619_v47 = vpop.f32.mrb[44].mxu0 }
 0xefd   :  { %v1671_v48 = vmul.f32 0.25, %v1619_v47  ;;  %v3194_v49 = vpop.f32.mrb[45].mxu0 }
 0xefe   :  { %v1622_v50 = vpop.f32.mrb[46].mxu0  ;;  %v1665_v51 = vpop.f32.mrb[40].mxu1 }
 0xeff   :  { %v1672_v52 = vmul.f32 0.25, %v1665_v51  ;;  %v3195_v53 = vpop.f32.mrb[47].mxu0  ;;  %v3200_v54 = vpop.f32.mrb[41].mxu1  ;;  %v1673_v56 = vadd.f32 %v3681_v12, %v1671_v48 }
 0xf00   :  { %v1668_v57 = vpop.f32.mrb[42].mxu1 }
 0xf01   :  { %v3201_v60 = vpop.f32.mrb[43].mxu1  ;;  %v1675_v61 = vsel %vm458_vm4, %v1673_v56, -inf  ;;  %v1674_v62 = vadd.f32 %v3686_v17, %v1672_v52 }
 0xf02   :  { %1676 = vmax.xlane.f32.xlu1 %v1675_v61 }
 0xf03   :  { %v1678_v63 = vsel %vm458_vm4, %v1674_v62, -inf }
 0xf04   :  { %1679 = vmax.xlane.f32.xlu0 %v1678_v63 }
 0xf8f   :  { %v1677_v0 = vpop.xlane.xlu1 %1676 }
 0xf90   :  { %v1681_v42 = vsub.f32 %v1673_v56, %v1677_v0 }
 0xf91   :  { %v1680_v1 = vpop.xlane.xlu0 %1679 }
 0xf92   :  { %v1683_v2 = vmul.f32 1.442695, %v1681_v42  ;;  %v1682_v3 = vsub.f32 %v1674_v62, %v1680_v1 }
 0xf94   :  { %3389 = vpow2.f32 %v1683_v2  ;;  %v1685_v4 = vmul.f32 1.442695, %v1682_v3 }
 0xf96   :  { %3391 = vpow2.f32 %v1685_v4 }
 0xf9e   :  { %v3390_v5 = vpop.eup %3389 }
 0xf9f   :  { %v1687_v12 = vsel %vm458_vm4, %v3390_v5, 0.0 }
 0xfa0   :  { %v3392_v6 = vpop.eup %3391  ;;  %1688 = vadd.xlane.f32.xlu1 %v1687_v12 }
 0xfa1   :  { %v1690_v7 = vsel %vm458_vm4, %v3392_v6, 0.0 }
 0xfa2   :  { %1691 = vadd.xlane.f32.xlu0 %v1690_v7 }
0x102d   :  { %v1689_v17 = vpop.xlane.xlu1 %1688 }
0x102e   :  { %3393 = vrcp.f32 %v1689_v17 }
0x102f   :  { %v1692_v8 = vpop.xlane.xlu0 %1691 }
0x1030   :  { %3395 = vrcp.f32 %v1692_v8  ;;  %v3419_v8 = vld [vmem:[%s4184_s2] ss:$0 sm:$0xff] }
0x1038   :  { %v3394_v9 = vpop.eup %3393 }
0x1039   :  { %v1695_v13 = vmul.f32 %v3394_v9, %v3390_v5 }
0x103a   :  { %v3396_v15 = vpop.eup %3395 }
0x103b   :  { %v1696_v18 = vmul.f32 %v3396_v15, %v3392_v6  ;;  %v1697_v55 = vpack.c.bf16 %v1695_v13, %v1695_v13 }
0x103d   :  { %3205 = vmatmul.mubr.msk.bf16.vlgmr.msra.gmra.mrb[48].mxu0 %vm458_vm4, %v1697_v55  ;;  %v1698_v59 = vpack.c.bf16 %v1696_v18, %v1696_v18  ;;  %v3420_v18 = vld [vmem:[%s4184_s2 + $0x1] ss:$0 sm:$0xff] }
0x103e   :  { %3215 = vmatpush3.bf16.msra.mxu0 %v3339_v16  ;;  %3218 = vmatprep.mubr.msk.bf16.mxu0 %vm3446_vm1, %v3445_v22 }
0x103f   :  { %3211 = vmatmul.mubr.msk.bf16.vlgmr.msra.gmra.mrb[44].mxu1 %vm458_vm4, %v1698_v59  ;;  %3216 = vmatprep.subr.bf16.mxu0 %v3445_v22 }
0x1040   :  { %3223 = vmatpush3.bf16.msra.mxu1 %v3340_v58  ;;  %3226 = vmatprep.mubr.msk.bf16.mxu1 %vm3446_vm1, %v3445_v22 }
0x1041   :  { %3224 = vmatprep.subr.bf16.mxu1 %v3445_v22 }
0x1042   :  { %3217 = vmatpush3.bf16.msra.mxu0 %v3341_v19 }
0x1043   :  { %3230 = vmatprep.subr.bf16.mxu0 %v3445_v22 }
0x1044   :  { %3225 = vmatpush3.bf16.msra.mxu1 %v3342_v20 }
0x1045   :  { %3219 = vmatmul.mubr.msk.bf16.vlgmr.msra.gmra.mrb[52].mxu0 %vm101_vm0, %v3880_v14  ;;  %3238 = vmatprep.subr.bf16.mxu1 %v3445_v22 }
0x1046   :  { %3231 = vmatpush3.bf16.msra.mxu0 %v3343_v21  ;;  %3234 = vmatprep.mubr.msk.bf16.mxu0 %vm3446_vm1, %v3445_v22 }
0x1047   :  { %3227 = vmatmul.mubr.msk.bf16.vlgmr.msra.gmra.mrb[48].mxu1 %vm101_vm0, %v3880_v14  ;;  %3232 = vmatprep.subr.bf16.mxu0 %v3445_v22 }
0x1048   :  { %3240 = vmatprep.mubr.msk.bf16.mxu1 %vm3446_vm1, %v3445_v22 }
0x104a   :  { %3233 = vmatpush3.bf16.msra.mxu0 %v3344_v23 }
0x104b   :  { %3244 = vmatprep.subr.bf16.mxu0 %v3445_v22 }
0x104d   :  { %3235 = vmatmul.mubr.msk.bf16.vlgmr.msra.gmra.mrb[56].mxu0 %vm101_vm0, %v3880_v14  ;;  %v2875_v14 = vld [vmem:[%s4182_s28 + $0x3] ss:$0 sm:$0xff] }
0x104e   :  { %3246 = vmatprep.mubr.msk.bf16.mxu0 %vm3446_vm1, %v3445_v22 }
0x1110   :  { %v3970_v24 = vpop.f32.mrb[48].mxu0 }
0x1111   :  { %v3206_v25 = vpop.f32.mrb[49].mxu0 }
0x1112   :  { %v1742_v26 = vpop.f32.mrb[50].mxu0  ;;  %v3972_v27 = vpop.f32.mrb[44].mxu1 }
0x1113   :  { %v1791_v28 = vpack.c.bf16 %v3972_v27, %v3970_v24  ;;  %v3207_v29 = vpop.f32.mrb[51].mxu0  ;;  %v3212_v30 = vpop.f32.mrb[45].mxu1 }
0x1114   :  { %v1788_v31 = vpop.f32.mrb[46].mxu1 }
0x1115   :  { %v3213_v32 = vpop.f32.mrb[47].mxu1 }
0x1118   :  { %v1854_v33 = vpop.f32.mrb[52].mxu0 }
0x1119   :  { %v3220_v34 = vpop.f32.mrb[53].mxu0  ;;  %v1855_v50 = vadd.f32 %v2866_v40, %v1854_v33 }
0x111a   :  { %v1857_v35 = vpop.f32.mrb[54].mxu0  ;;  %v1920_v36 = vpop.f32.mrb[48].mxu1 }
0x111b   :  { %v1921_v37 = vadd.f32 %v2875_v14, %v1920_v36  ;;  %v3221_v38 = vpop.f32.mrb[55].mxu0  ;;  %v3228_v41 = vpop.f32.mrb[49].mxu1  ;;  %v1858_v56 = vadd.f32 %v2866_v40, %v1857_v35  ;;  %v1993_v62 = vpack.c.bf16 %v1855_v50, %v1855_v50  ;;  %v3346_v36 = vld [vmem:[%s4139_s12 + $0x18] sm:$0xff]  }
0x111c   :  { %v1923_v43 = vpop.f32.mrb[50].mxu1  ;;  %v3345_v41 = vld [vmem:[%s4139_s12 + $0x10] sm:$0xff]  }
0x111d   :  { %v1995_v44 = vpack.c.bf16 %v1921_v37, %v1921_v37  ;;  %v1924_v45 = vadd.f32 %v2875_v14, %v1923_v43  ;;  %v3229_v39 = vpop.f32.mrb[51].mxu1  ;;  %v1994_v0 = vpack.c.bf16 %v1858_v56, %v1858_v56 }
0x111f   :  { %v2003_v47 = vsel %vm349_vm2, %v1995_v44, 0  ;;  %v1996_v48 = vpack.c.bf16 %v1924_v45, %v1924_v45 }
0x1120   :  { %v1986_v49 = vpop.f32.mrb[56].mxu0  ;;  %3239 = vmatpush3.bf16.xpose.msra.mxu1 %v2003_v47 }
0x1121   :  { %v2049_v51 = vsel %vm349_vm2, %v1996_v48, 0  ;;  %v1987_v52 = vadd.f32 %v2884_v46, %v1986_v49  ;;  %v3236_v53 = vpop.f32.mrb[57].mxu0  ;;  %3250 = vmatprep.subr.bf16.mxu1 %v3445_v22 }
0x1122   :  { %v1989_v54 = vpop.f32.mrb[58].mxu0  ;;  %3245 = vmatpush3.bf16.xpose.msra.mxu0 %v2049_v51  ;;  %v2899_v53 = vld [vmem:[%s4140_s13 + $0x1] ss:$0 sm:$0xff] }
0x1123   :  { %v1997_v57 = vpack.c.bf16 %v1987_v52, %v1987_v52  ;;  %v1990_v60 = vadd.f32 %v2884_v46, %v1989_v54  ;;  %v3237_v61 = vpop.f32.mrb[59].mxu0  ;;  %3256 = vmatprep.subr.bf16.mxu0 %v3445_v22 }
0x1125   :  { %v1998_v63 = vpack.c.bf16 %v1990_v60, %v1990_v60  ;;  %v2123_v42 = vsel %vm486_vm3, %v1997_v57, 0 }
0x1127   :  { %3241 = vmatmul.mubr.msk.bf16.vlgmr.msra.gmra.mrb[52].mxu1 %vm349_vm2, %v1993_v62  ;;  %v2169_v1 = vsel %vm486_vm3, %v1998_v63, 0 }
0x1128   :  { %3251 = vmatpush3.bf16.msra.mxu1 %v2123_v42  ;;  %3252 = vmatprep.mubr.msk.bf16.mxu1 %vm3446_vm1, %v3445_v22 }
0x1129   :  { %3247 = vmatmul.mubr.msk.bf16.vlgmr.msra.gmra.mrb[60].mxu0 %vm349_vm2, %v1994_v0  ;;  %3262 = vmatprep.subr.bf16.mxu1 %v3445_v22 }
0x112a   :  { %3257 = vmatpush3.bf16.msra.mxu0 %v2169_v1  ;;  %3258 = vmatprep.mubr.msk.bf16.mxu0 %vm3446_vm1, %v3445_v22 }
0x112b   :  { %3268 = vmatprep.subr.bf16.mxu0 %v3445_v22 }
0x11fa   :  { %v2039_v2 = vpop.f32.mrb[52].mxu1 }
0x11fb   :  { %v2091_v3 = vmul.f32 0.25, %v2039_v2  ;;  %v3242_v4 = vpop.f32.mrb[53].mxu1 }
0x11fc   :  { %v2042_v5 = vpop.f32.mrb[54].mxu1  ;;  %v2085_v12 = vpop.f32.mrb[60].mxu0 }
0x11fd   :  { %v2092_v6 = vmul.f32 0.25, %v2085_v12  ;;  %v3243_v7 = vpop.f32.mrb[55].mxu1  ;;  %v3248_v17 = vpop.f32.mrb[61].mxu0  ;;  %v2093_v9 = vadd.f32 %v3419_v8, %v2091_v3 }
0x11fe   :  { %v2088_v13 = vpop.f32.mrb[62].mxu0 }
0x11ff   :  { %v3249_v15 = vpop.f32.mrb[63].mxu0  ;;  %v2095_v16 = vsel %vm458_vm4, %v2093_v9, -inf  ;;  %v2094_v55 = vadd.f32 %v3420_v18, %v2092_v6  ;;  %v3348_v13 = vld [vmem:[%s4143_s16 + $0x18] sm:$0xff]  }
0x1200   :  { %2096 = vmax.xlane.f32.xlu0 %v2095_v16 }
0x1201   :  { %v2098_v58 = vsel %vm458_vm4, %v2094_v55, -inf }
0x1202   :  { %2099 = vmax.xlane.f32.xlu1 %v2098_v58 }
0x128d   :  { %v2097_v59 = vpop.xlane.xlu0 %2096 }
0x128e   :  { %v2101_v19 = vsub.f32 %v2093_v9, %v2097_v59 }
0x128f   :  { %v2100_v20 = vpop.xlane.xlu1 %2099 }
0x1290   :  { %v2103_v21 = vmul.f32 1.442695, %v2101_v19  ;;  %v2102_v23 = vsub.f32 %v2094_v55, %v2100_v20  ;;  %v2902_v20 = vld [vmem:[%s4141_s14 + $0x1] ss:$0 sm:$0xff] }
0x1292   :  { %3397 = vpow2.f32 %v2103_v21  ;;  %v2105_v25 = vmul.f32 1.442695, %v2102_v23 }
0x1294   :  { %3399 = vpow2.f32 %v2105_v25 }
0x129c   :  { %v3398_v26 = vpop.eup %3397 }
0x129d   :  { %v2107_v29 = vsel %vm458_vm4, %v3398_v26, 0.0 }
0x129e   :  { %v3400_v30 = vpop.eup %3399  ;;  %2108 = vadd.xlane.f32.xlu0 %v2107_v29  ;;  %v2903_v29 = vld [vmem:[%s4142_s15 + $0x1] ss:$0 sm:$0xff] }
0x129f   :  { %v2110_v31 = vsel %vm458_vm4, %v3400_v30, 0.0 }
0x12a0   :  { %2111 = vadd.xlane.f32.xlu1 %v2110_v31 }
0x132b   :  { %v2109_v32 = vpop.xlane.xlu0 %2108 }
0x132c   :  { %3401 = vrcp.f32 %v2109_v32 }
0x132d   :  { %v2112_v33 = vpop.xlane.xlu1 %2111 }
0x132e   :  { %3403 = vrcp.f32 %v2112_v33 }
0x1336   :  { %v3402_v14 = vpop.eup %3401 }
0x1337   :  { %v2115_v34 = vmul.f32 %v3402_v14, %v3398_v26  ;;  %v3349_v14 = vld [vmem:[%s4145_s18 + $0x20] sm:$0xff]  }
0x1338   :  { %v3404_v35 = vpop.eup %3403 }
0x1339   :  { %v2116_v37 = vmul.f32 %v3404_v35, %v3400_v30  ;;  %v2117_v38 = vpack.c.bf16 %v2115_v34, %v2115_v34  ;;  %v3350_v34 = vld [vmem:[%s4145_s18 + $0x28] sm:$0xff]   ;;  %v3351_v35 = vld [vmem:[%s4145_s18 + $0x30] sm:$0xff]  }
0x133b   :  { %3253 = vmatmul.mubr.msk.bf16.vlgmr.msra.gmra.mrb[56].mxu1 %vm458_vm4, %v2117_v38  ;;  %v2118_v43 = vpack.c.bf16 %v2116_v37, %v2116_v37  ;;  %v2909_v37 = vld [vmem:[%s4144_s17 + $0x1] ss:$0 sm:$0xff] }
0x133c   :  { %3263 = vmatpush3.bf16.msra.mxu1 %v3346_v36  ;;  %3264 = vmatprep.mubr.msk.bf16.mxu1 %vm3446_vm1, %v3445_v22  ;;  %v3352_v36 = vld [vmem:[%s4145_s18 + $0x38] sm:$0xff]  }
0x133d   :  { %3259 = vmatmul.mubr.msk.bf16.vlgmr.msra.gmra.mrb[64].mxu0 %vm458_vm4, %v2118_v43  ;;  %3274 = vmatprep.subr.bf16.mxu1 %v3445_v22 }
0x133e   :  { %3269 = vmatpush3.bf16.msra.mxu0 %v3345_v41  ;;  %3270 = vmatprep.mubr.msk.bf16.mxu0 %vm3446_vm1, %v3445_v22 }
0x133f   :  { %3282 = vmatprep.subr.bf16.mxu0 %v3445_v22 }
0x1345   :  { %3271 = vmatmul.mubr.msk.bf16.vlgmr.msra.gmra.mrb[68].mxu0 %vm349_vm2, %v1791_v28 }
0x1346   :  { %3290 = vmatprep.mubr.msk.bf16.mxu0 %vm3446_vm1, %v3445_v22  ;;  %3283 = vmatpush3.bf16.msra.mxu0 %v3349_v14  ;;  %v2931_v14 = vld [vmem:[%s4185_s30 + $0x1] ss:$0 sm:$0xff] }
0x1347   :  { %3284 = vmatprep.subr.bf16.mxu0 %v3445_v22 }
0x134a   :  { %3285 = vmatpush3.bf16.msra.mxu0 %v3350_v34 }
0x134b   :  { %3286 = vmatprep.subr.bf16.mxu0 %v3445_v22 }
0x134e   :  { %3287 = vmatpush3.bf16.msra.mxu0 %v3351_v35 }
0x134f   :  { %3288 = vmatprep.subr.bf16.mxu0 %v3445_v22 }
0x1352   :  { %3289 = vmatpush3.bf16.msra.mxu0 %v3352_v36 }
0x140e   :  { %v2159_v44 = vpop.f32.mrb[56].mxu1 }
0x140f   :  { %v3254_v45 = vpop.f32.mrb[57].mxu1 }
0x1410   :  { %v2162_v39 = vpop.f32.mrb[58].mxu1  ;;  %v2205_v40 = vpop.f32.mrb[64].mxu0 }
0x1411   :  { %v2211_v46 = vpack.c.bf16 %v2205_v40, %v2159_v44  ;;  %v3255_v47 = vpop.f32.mrb[59].mxu1  ;;  %v3260_v48 = vpop.f32.mrb[65].mxu0 }
0x1412   :  { %v2208_v49 = vpop.f32.mrb[66].mxu0 }
0x1413   :  { %v3261_v50 = vpop.f32.mrb[67].mxu0  ;;  %3265 = vmatmul.mubr.msk.bf16.vlgmr.msra.gmra.mrb[60].mxu1 %vm349_vm2, %v2211_v46 }
0x1414   :  { %3278 = vmatprep.mubr.msk.bf16.mxu1 %vm3446_vm1, %v3445_v22 }
0x1418   :  { %v2308_v24 = vpop.f32.mrb[68].mxu0 }
0x1419   :  { %v3272_v27 = vpop.f32.mrb[69].mxu0 }
0x141a   :  { %v2311_v28 = vpop.f32.mrb[70].mxu0 }
0x141b   :  { %v3273_v51 = vpop.f32.mrb[71].mxu0 }
0x14e6   :  { %v2258_v52 = vpop.f32.mrb[60].mxu1 }
0x14e7   :  { %v2309_v54 = vadd.f32 %v2308_v24, %v2258_v52  ;;  %v3266_v56 = vpop.f32.mrb[61].mxu1 }
0x14e8   :  { %v2261_v57 = vpop.f32.mrb[62].mxu1 }
0x14e9   :  { %v2323_v60 = vadd.f32 %v2899_v53, %v2309_v54  ;;  %v2312_v61 = vadd.f32 %v2311_v28, %v2261_v57  ;;  %v3267_v62 = vpop.f32.mrb[63].mxu1 }
0x14eb   :  { %v2324_v63 = vadd.f32 %v2899_v53, %v2312_v61  ;;  %v2325_v0 = vadd.f32 %v2323_v60, %v3871_v10 }
0x14ed   :  { %v2331_v42 = vsel %vm101_vm0, %v2325_v0, 0.0  ;;  %v2326_v1 = vadd.f32 %v2324_v63, %v3873_v11  ;;  %v3347_v11 = vld [vmem:[%s4143_s16 + $0x10] sm:$0xff]  }
0x14ee   :  { %2332 = vadd.xlane.f32.xlu0 %v2331_v42  ;;  %3275 = vmatpush3.bf16.msra.mxu1 %v3347_v11 }
0x14ef   :  { %v2334_v2 = vsel %vm101_vm0, %v2326_v1, 0.0  ;;  %3276 = vmatprep.subr.bf16.mxu1 %v3445_v22 }
0x14f0   :  { %2335 = vadd.xlane.f32.xlu1 %v2334_v2 }
0x14f2   :  { %3277 = vmatpush3.bf16.msra.mxu1 %v3348_v13 }
0x14f3   :  { %3294 = vmatprep.subr.bf16.mxu1 %v3445_v22 }
0x157b   :  { %v2333_v3 = vpop.xlane.xlu0 %2332 }
0x157c   :  { %v2337_v4 = vmul.f32 0.03125, %v2333_v3 }
0x157d   :  { %v2336_v5 = vpop.xlane.xlu1 %2335 }
0x157e   :  { %v2339_v12 = vsub.f32 %v2325_v0, %v2337_v4  ;;  %v2338_v6 = vmul.f32 0.03125, %v2336_v5  ;;  %v2922_v0 = vld [vmem:[%s4146_s19 + $0x1] ss:$0 sm:$0xff] }
0x1580   :  { %v2340_v7 = vsub.f32 %v2326_v1, %v2338_v6  ;;  %v2341_v17 = vmul.f32 %v2339_v12, %v2339_v12 }
0x1582   :  { %v2343_v8 = vsel %vm101_vm0, %v2341_v17, 0.0  ;;  %v2342_v9 = vmul.f32 %v2340_v7, %v2340_v7 }
0x1583   :  { %2344 = vadd.xlane.f32.xlu0 %v2343_v8 }
0x1584   :  { %v2346_v10 = vsel %vm101_vm0, %v2342_v9, 0.0 }
0x1585   :  { %2347 = vadd.xlane.f32.xlu1 %v2346_v10 }
0x1610   :  { %v2345_v15 = vpop.xlane.xlu0 %2344 }
0x1611   :  { %v2349_v16 = vmul.f32 0.03125, %v2345_v15 }
0x1612   :  { %v2348_v18 = vpop.xlane.xlu1 %2347 }
0x1613   :  { %v2351_v55 = vadd.f32 1e-12, %v2349_v16  ;;  %v2350_v58 = vmul.f32 0.03125, %v2348_v18 }
0x1615   :  { %3405 = vrsqrt.f32 %v2351_v55  ;;  %v2352_v59 = vadd.f32 1e-12, %v2350_v58 }
0x1617   :  { %3407 = vrsqrt.f32 %v2352_v59  ;;  %v3353_v59 = vld [vmem:[%s4149_s22] sm:$0xff]  }
0x161f   :  { %v3406_v19 = vpop.eup %3405 }
0x1620   :  { %v2355_v21 = vmul.f32 %v3406_v19, %v2339_v12  ;;  %v3354_v19 = vld [vmem:[%s4149_s22 + $0x8] sm:$0xff]  }
0x1621   :  { %v3408_v23 = vpop.eup %3407 }
0x1622   :  { %v2363_v25 = vmul.f32 %v2902_v20, %v2355_v21  ;;  %v2356_v26 = vmul.f32 %v3408_v23, %v2340_v7 }
0x1624   :  { %v2364_v30 = vmul.f32 %v2902_v20, %v2356_v26  ;;  %v2371_v31 = vadd.f32 %v2903_v29, %v2363_v25 }
0x1626   :  { %v2372_v32 = vadd.f32 %v2903_v29, %v2364_v30 }
0x1628   :  { %v2373_v33 = vpack.c.bf16 %v2372_v32, %v2371_v31 }
0x162a   :  { %3279 = vmatmul.mubr.msk.bf16.vlgmr.msra.gmra.mrb[64].mxu1 %vm101_vm0, %v2373_v33 }
0x162b   :  { %3298 = vmatprep.mubr.msk.bf16.mxu1 %vm3446_vm1, %v3445_v22  ;;  %3295 = vmatpush3.bf16.msra.mxu1 %v3353_v59 }
0x162c   :  { %3296 = vmatprep.subr.bf16.mxu1 %v3445_v22 }
0x162f   :  { %3297 = vmatpush3.bf16.msra.mxu1 %v3354_v19 }
0x1630   :  { %3302 = vmatprep.subr.bf16.mxu1 %v3445_v22 }
0x16fd   :  { %v2436_v38 = vpop.f32.mrb[64].mxu1 }
0x16fe   :  { %v2437_v41 = vadd.f32 %v2909_v37, %v2436_v38  ;;  %v3280_v43 = vpop.f32.mrb[65].mxu1 }
0x16ff   :  { %v2439_v44 = vpop.f32.mrb[66].mxu1 }
0x1700   :  { %v2445_v45 = vmul.f32 0.044715, %v2437_v41  ;;  %v2440_v39 = vadd.f32 %v2909_v37, %v2439_v44  ;;  %v3281_v40 = vpop.f32.mrb[67].mxu1  ;;  %v2443_v56 = vmul.f32 0.5, %v2437_v41 }
0x1702   :  { %v2447_v46 = vmul.f32 %v2445_v45, %v2437_v41  ;;  %v2446_v47 = vmul.f32 0.044715, %v2440_v39  ;;  %v2444_v57 = vmul.f32 0.5, %v2440_v39 }
0x1704   :  { %v2449_v48 = vmul.f32 %v2447_v46, %v2437_v41  ;;  %v2448_v49 = vmul.f32 %v2446_v47, %v2440_v39  ;;  %v3355_v47 = vld [vmem:[%s4151_s24] sm:$0xff]  }
0x1706   :  { %v2451_v50 = vadd.f32 %v2449_v48, %v2437_v41  ;;  %v2450_v24 = vmul.f32 %v2448_v49, %v2440_v39  ;;  %v3356_v48 = vld [vmem:[%s4151_s24 + $0x8] sm:$0xff]   ;;  %v2932_v49 = vld [vmem:[%s4150_s23] ss:$0 sm:$0xff]  ;;  %s3447_s24 = smov [#allocation2]  }
0x1707   :  { %s2747_s11 = sshll.u32 %s3447_s24, 4  ;;  %s2748_s11 = int_to_ptr.vmem [resolvable:$true] %s2747_s11 }
0x1708   :  { %v2453_v27 = vmul.f32 0.7978846, %v2451_v50  ;;  %v2452_v28 = vadd.f32 %v2450_v24, %v2440_v39  ;;  %s3421_s23 = scalar_lea.vmem %s2748_s11, 32  ;;  %p3426_p1 = scmp.lt.s32.totalorder %s2748_s11, %s2748_s11 }
0x1709   :  { %p3422_p0 = scmp.ne.s32.totalorder %s2748_s11, %s3421_s23  ;;  %p3427_p2 = scmp.lt.s32.totalorder %s3421_s23, %s3421_s23 }
0x170a   :  { %3409 = vtanh.f32 %v2453_v27  ;;  %v2454_v51 = vmul.f32 0.7978846, %v2452_v28 }
0x170b   :  { %p3428_p3 = por %p3427_p2, %p3426_p1 }
0x170c   :  { %3411 = vtanh.f32 %v2454_v51 }
0x170d   :  { %p3429_p4 = pnand %p3428_p3, %p3422_p0 }
0x1714   :  { %v3410_v52 = vpop.eup %3409 }
0x1715   :  { %v2457_v53 = vadd.f32 1.0, %v3410_v52 }
0x1716   :  { %v3412_v54 = vpop.eup %3411 }
0x1717   :  { %v2458_v60 = vadd.f32 1.0, %v3412_v54  ;;  %v2459_v61 = vmul.f32 %v2457_v53, %v2443_v56 }
0x1719   :  { %v2460_v62 = vmul.f32 %v2458_v60, %v2444_v57 }
0x171b   :  { %v2461_v63 = vpack.c.bf16 %v2460_v62, %v2459_v61 }
0x171d   :  { %3291 = vmatmul.mubr.msk.bf16.vlgmr.msra.gmra.mrb[72].mxu0 %vm1280_vm5, %v2461_v63 }
0x17f0   :  { %v2540_v42 = vpop.f32.mrb[72].mxu0 }
0x17f1   :  { %v2541_v1 = vadd.f32 %v2922_v0, %v2540_v42  ;;  %v3292_v2 = vpop.f32.mrb[73].mxu0 }
0x17f2   :  { %v2543_v3 = vpop.f32.mrb[74].mxu0 }
0x17f3   :  { %v2544_v4 = vadd.f32 %v2922_v0, %v2543_v3  ;;  %v3293_v5 = vpop.f32.mrb[75].mxu0  ;;  %v2547_v12 = vadd.f32 %v2541_v1, %v2371_v31  ;;  %v2930_v31 = vld [vmem:[%s4147_s20 + $0x1] ss:$0 sm:$0xff] }
0x17f5   :  { %v2553_v6 = vsel %vm101_vm0, %v2547_v12, 0.0  ;;  %v2548_v7 = vadd.f32 %v2544_v4, %v2372_v32 }
0x17f6   :  { %2554 = vadd.xlane.f32.xlu1 %v2553_v6 }
0x17f7   :  { %v2556_v17 = vsel %vm101_vm0, %v2548_v7, 0.0 }
0x17f8   :  { %2557 = vadd.xlane.f32.xlu0 %v2556_v17 }
0x1883   :  { %v2555_v8 = vpop.xlane.xlu1 %2554 }
0x1884   :  { %v2559_v9 = vmul.f32 0.03125, %v2555_v8 }
0x1885   :  { %v2558_v10 = vpop.xlane.xlu0 %2557 }
0x1886   :  { %v2561_v11 = vsub.f32 %v2547_v12, %v2559_v9  ;;  %v2560_v13 = vmul.f32 0.03125, %v2558_v10 }
0x1888   :  { %v2562_v15 = vsub.f32 %v2548_v7, %v2560_v13  ;;  %v2563_v16 = vmul.f32 %v2561_v11, %v2561_v11 }
0x188a   :  { %v2565_v18 = vsel %vm101_vm0, %v2563_v16, 0.0  ;;  %v2564_v55 = vmul.f32 %v2562_v15, %v2562_v15 }
0x188b   :  { %2566 = vadd.xlane.f32.xlu1 %v2565_v18 }
0x188c   :  { %v2568_v58 = vsel %vm101_vm0, %v2564_v55, 0.0 }
0x188d   :  { %2569 = vadd.xlane.f32.xlu0 %v2568_v58 }
0x1918   :  { %v2567_v20 = vpop.xlane.xlu1 %2566 }
0x1919   :  { %v2571_v21 = vmul.f32 0.03125, %v2567_v20 }
0x191a   :  { %v2570_v23 = vpop.xlane.xlu0 %2569 }
0x191b   :  { %v2573_v25 = vadd.f32 1e-12, %v2571_v21  ;;  %v2572_v26 = vmul.f32 0.03125, %v2570_v23 }
0x191d   :  { %3413 = vrsqrt.f32 %v2573_v25  ;;  %v2574_v29 = vadd.f32 1e-12, %v2572_v26 }
0x191f   :  { %3415 = vrsqrt.f32 %v2574_v29 }
0x1927   :  { %v3414_v30 = vpop.eup %3413 }
0x1928   :  { %v2577_v32 = vmul.f32 %v3414_v30, %v2561_v11 }
0x1929   :  { %v3416_v33 = vpop.eup %3415 }
0x192a   :  { %v2585_v34 = vmul.f32 %v2930_v31, %v2577_v32  ;;  %v2578_v35 = vmul.f32 %v3416_v33, %v2562_v15 }
0x192c   :  { %v2593_v36 = vadd.f32 %v2931_v14, %v2585_v34  ;;  %v2586_v37 = vmul.f32 %v2930_v31, %v2578_v35 }
0x192e   :  { %v2594_v38 = vadd.f32 %v2931_v14, %v2586_v37  ;;  %v2595_v41 = vpack.c.bf16 %v2593_v36, %v2593_v36 }
0x1930   :  { %v2596_v43 = vpack.c.bf16 %v2594_v38, %v2594_v38  ;;  %v2610_v45 = vunpack.c.l.b16 %v2595_v41 }
0x1932   :  { %v2611_v44 = vunpack.c.l.b16 %v2596_v43 }
0x1934   :  { %v2612_v39 = vrot.slane %v2611_v44, 7 }
0x1936   :  { %v2614_v40 = vsel %vm2613_vm6, %v2612_v39, %v2610_v45 }
0x1937   :  { %v2615_v46 = vpack.c.b16 %v2614_v40, %v2614_v40 }
0x1939   :  { %3299 = vmatmul.mubr.msk.bf16.vlgmr.msra.gmra.mrb[68].mxu1 %vm101_vm0, %v2615_v46 }
0x193a   :  { %3306 = vmatprep.mubr.msk.bf16.mxu1 %vm3446_vm1, %v3445_v22  ;;  %3303 = vmatpush3.bf16.msra.mxu1 %v3355_v47 }
0x193b   :  { %3304 = vmatprep.subr.bf16.mxu1 %v3445_v22  ;;  %v2936_v22 = vld [vmem:[%s4152_s25] ss:$0 sm:$0xff] }
0x193e   :  { %3305 = vmatpush3.bf16.msra.mxu1 %v3356_v48 }
0x1a0c   :  { %v2665_v50 = vpop.f32.mrb[68].mxu1 }
0x1a0d   :  { %v2666_v24 = vadd.f32 %v2932_v49, %v2665_v50  ;;  %v3300_v27 = vpop.f32.mrb[69].mxu1 }
0x1a0e   :  { %v2668_v28 = vpop.f32.mrb[70].mxu1 }
0x1a0f   :  { %3417 = vtanh.f32 %v2666_v24  ;;  %v3301_v51 = vpop.f32.mrb[71].mxu1 }
0x1a19   :  { %v3418_v52 = vpop.eup %3417 }
0x1a1a   :  { %v2672_v53 = vpack.c.bf16 %v3418_v52, %v3418_v52 }
0x1a1c   :  { %3307 = vmatmul.mubr.msk.bf16.vlgmr.msra.gmra.mrb[72].mxu1 %vm101_vm0, %v2672_v53 }
0x1aef   :  { %v2733_v54 = vpop.f32.mrb[72].mxu1 }
0x1af0   :  { %v2734_v56 = vadd.f32 %v2936_v22, %v2733_v54  ;;  %v3308_v57 = vpop.f32.mrb[73].mxu1 }
0x1af1   :  { %v2736_v60 = vpop.f32.mrb[74].mxu1 }
0x1af2   :  { %v3309_v61 = vpop.f32.mrb[75].mxu1  ;;  %2740 = vst.msk [vmem:[#allocation2] sm:$0x3] %vm2739_vm7, %v2734_v56 }
0x1af3   :  { %3432 = shalt.err (!%p3429_p4)
}
0x1af4   :  { %s3433_s25 = scalar_lea.hbm %s4153_s26, 32 }
0x1af5   :  { %p3434_p5 = scmp.ne.s32.totalorder %s4153_s26, %s3433_s25  ;;  %p3437_p6 = scmp.lt.u32.totalorder %s3433_s25, %s4153_s26 }
0x1af7   :  { %p3439_p7 = pnand %p3437_p6, %p3434_p5 }
0x1af9   :  { %3442 = shalt.err (!%p3439_p7)
}
0x1afa   :  { %2750 = dma.vmem_to_hbm [thread:$0]  %s2748_s11, 32, %s4153_s26, [#allocation3]  }
0x1afb   :  { %3443 = dma.done.wait [#allocation3], 32  }
0x1afc   :  { %3444 = vsyncadd [#allocation3], 4294967264 }
0x1afd   :  { %2754 = vsyncpa [#allocation3], 1 }

</bundles_post_ra>
